<compile_context>
chip_gen: v7x
topology: tpu7x:2x2x1
jax: 0.10.0
libtpu: 0.0.40
codegen_flags: <defaults>
</compile_context>

<pallas_src>
import functools
import math

import jax
import jax.numpy as jnp
import numpy as np
from jax.experimental import pallas as pl
from jax.experimental.pallas import tpu as pltpu


# --------------------------------------------------------------------------- helpers
def _round_up(x, m):
    return (x + m - 1) // m * m


def _choose_tile(padded_dim, block, quantum):
    """Largest multiple of `quantum` that divides `padded_dim` and is <= block."""
    t = max(quantum, min(block, padded_dim) // quantum * quantum)
    while padded_dim % t:
        t -= quantum
    return t


def _pad2(a, rows, cols, value=0.0, dtype=jnp.float32):
    a = jnp.asarray(a, jnp.float32)
    a = jnp.pad(a, ((0, rows - a.shape[0]), (0, cols - a.shape[1])),
                constant_values=value)
    return a.astype(dtype)


def _stable_softplus(x):
    # softplus(x) = max(x, 0) + log(1 + exp(-|x|))  -- never overflows
    return jnp.maximum(x, 0.0) + jnp.log(1.0 + jnp.exp(-jnp.abs(x)))


def _sigmoid_and_softplus(theta):
    """Return (sigmoid(theta), softplus(theta), softplus(-theta)) sharing one exp."""
    e = jnp.exp(-jnp.abs(theta))
    log1pe = jnp.log(1.0 + e)
    sp_pos = jnp.maximum(theta, 0.0) + log1pe     # softplus(theta)  = -log(1 - phi)
    sp_neg = jnp.maximum(-theta, 0.0) + log1pe    # softplus(-theta) = -log(phi)
    inv = 1.0 / (1.0 + e)
    phi = jnp.where(theta >= 0.0, inv, e * inv)   # stable sigmoid
    return phi, sp_pos, sp_neg


# --------------------------------------------------------------------------- kernel
def _mlp_layer_kernel(x_ref, w_mu_ref, w_rho_ref, w_theta_ref, lu_w_ref, eps_w_ref,
                      b_mu_ref, b_rho_ref, b_theta_ref, lu_b_ref, eps_b_ref,
                      out_ref, klp_ref, acc_ref, klv_ref,
                      *, tile_k, x_resident, matmul_dtype,
                      log_phi_prior, log_1m_phi_prior,
                      log_sigma_prior, inv_sigma_prior_sq):
    b = pl.program_id(0)        # batch-tile axis     ("parallel")
    k = pl.program_id(2)        # Din reduction axis  ("arbitrary", innermost)
    nk = pl.num_programs(2)

    def kl_elem(mu, sigma, phi, sp_pos, sp_neg):
        # log(phi) = -softplus(-theta) = -sp_neg ; log(1-phi) = -softplus(theta) = -sp_pos
        return (phi * (-sp_neg - log_phi_prior)
                + (1.0 - phi) * (-sp_pos - log_1m_phi_prior)
                + phi * (log_sigma_prior - jnp.log(sigma)
                         + 0.5 * (sigma * sigma + mu * mu) * inv_sigma_prior_sq
                         - 0.5))

    # ------------------ weight tile: sample w (needed for every batch tile) ----------
    w_mu = w_mu_ref[...].astype(jnp.float32)
    w_rho = w_rho_ref[...].astype(jnp.float32)
    w_theta = w_theta_ref[...].astype(jnp.float32)
    sigma_w = _stable_softplus(w_rho)
    # hard gumbel-softmax gate (temp-independent): gamma = 1[ theta + logit(u) > 0 ]
    gamma_w = ((w_theta + lu_w_ref[...].astype(jnp.float32)) > 0.0).astype(jnp.float32)
    w = gamma_w * (w_mu + sigma_w * eps_w_ref[...].astype(jnp.float32))

    # ------------------ weight KL: only on the first batch tile ----------------------
    @pl.when(k == 0)
    def _zero_kl():
        klv_ref[...] = jnp.zeros_like(klv_ref)

    @pl.when(b == 0)
    def _weight_kl():
        phi, sp_pos, sp_neg = _sigmoid_and_softplus(w_theta)
        kl_w = kl_elem(w_mu, sigma_w, phi, sp_pos, sp_neg)
        # defer the cross-lane reduce: keep a (1, tn) running partial per k step
        klv_ref[...] = klv_ref[...] + jnp.sum(kl_w, axis=0, keepdims=True)

    # ------------------ MXU matmul, accumulated over the Din (k) axis -----------------
    if x_resident:
        x_tile = x_ref[:, pl.ds(k * tile_k, tile_k)]   # X block resident across j, k
    else:
        x_tile = x_ref[...]
    if matmul_dtype is not None:
        x_tile = x_tile.astype(matmul_dtype)
        w = w.astype(matmul_dtype)

    @pl.when(k == 0)
    def _zero_acc():
        acc_ref[...] = jnp.zeros_like(acc_ref)

    acc_ref[...] += jnp.dot(x_tile, w, preferred_element_type=jnp.float32)

    # ------------------ finalize once per (batch, Dout) tile: bias + output + KL -----
    @pl.when(k == nk - 1)
    def _finalize():
        b_mu = b_mu_ref[...].astype(jnp.float32)
        b_rho = b_rho_ref[...].astype(jnp.float32)
        b_theta = b_theta_ref[...].astype(jnp.float32)
        sigma_b = _stable_softplus(b_rho)
        gamma_b = ((b_theta + lu_b_ref[...].astype(jnp.float32)) > 0.0
                   ).astype(jnp.float32)
        bias = gamma_b * (b_mu + sigma_b * eps_b_ref[...].astype(jnp.float32))
        out_ref[...] = (acc_ref[...] + bias).astype(out_ref.dtype)

        phi_b, sp_pos_b, sp_neg_b = _sigmoid_and_softplus(b_theta)
        kl_b = kl_elem(b_mu, sigma_b, phi_b, sp_pos_b, sp_neg_b)
        # batch-independent KL counted exactly once (b == 0 slice); other b-tiles emit 0
        klp_ref[0, 0] = jnp.where(b == 0,
                                  jnp.sum(klv_ref[...]) + jnp.sum(kl_b),
                                  0.0)


# --------------------------------------------------------------------------- wrapper
def mlp_layer_forward(x, params, temp, phi_prior, rho_prior, *,
                      noise=None, rng=None,
                      param_dtype=jnp.bfloat16, matmul_dtype=jnp.bfloat16,
                      block_b=512, block_k=1024, block_n=512,
                      vmem_budget_bytes=40 * 1024 * 1024,
                      vmem_limit_bytes=64 * 1024 * 1024):
    """Forward pass of MLPLayer as one fused Pallas TPU kernel.

    Returns (output [B, Dout] float32, kl scalar float32).

    noise=None -> Monte-Carlo noise drawn with jax.random (from `rng`);
    noise=dict(u_w, u_b, eps_w, eps_b) -> externally supplied (deterministic checks).
    param_dtype / matmul_dtype default to bfloat16 streaming + bf16 MXU feed; pass
    jnp.float32 / None for exact f32 verification.
    """
    # The *hard* gumbel-softmax forward value and the KL are independent of temp (>0).
    del temp

    x = jnp.asarray(x, jnp.float32)
    B, Din = x.shape
    Dout = params["w_mu"].shape[1]
    phi_prior = float(phi_prior)
    rho_prior = float(rho_prior)

    if noise is None:
        if rng is None:
            rng = jax.random.PRNGKey(0)
        ku, kb, kew, keb = jax.random.split(rng, 4)
        e = 1e-6
        noise = {
            "u_w": jax.random.uniform(ku, (Din, Dout), jnp.float32, e, 1.0 - e),
            "u_b": jax.random.uniform(kb, (1, Dout), jnp.float32, e, 1.0 - e),
            "eps_w": jax.random.normal(kew, (Din, Dout), jnp.float32),
            "eps_b": jax.random.normal(keb, (1, Dout), jnp.float32),
        }

    # ---- trace-time prior constants (python/f64 math) ----
    sigma_prior = math.log1p(math.exp(rho_prior))
    theta_pad = math.log(phi_prior / (1.0 - phi_prior))   # KL-neutral padding value
    consts = dict(
        log_phi_prior=math.log(phi_prior),
        log_1m_phi_prior=math.log1p(-phi_prior),
        log_sigma_prior=math.log(sigma_prior),
        inv_sigma_prior_sq=1.0 / (sigma_prior * sigma_prior),
    )

    # ---- tile planning under an explicit VMEM budget (v7x: keep <= ~48 MiB / TC) ----
    din_p = _round_up(Din, 128)
    dout_p = _round_up(Dout, 128)
    b0 = _round_up(max(B, 8), 8)
    x_dtype = jnp.float32 if matmul_dtype is None else matmul_dtype
    xb = np.dtype(x_dtype).itemsize
    pb = np.dtype(param_dtype).itemsize

    blk_b, blk_k, blk_n = block_b, block_k, block_n
    x_resident = True
    tk = tn = tb = est = None
    for _ in range(32):
        tk = _choose_tile(din_p, blk_k, 128)
        tn = _choose_tile(dout_p, blk_n, 128)
        tb = max(8, min(blk_b, b0) // 8 * 8)
        x_cols = din_p if x_resident else tk
        est = (2 * tb * x_cols * xb                  # X block (double buffered)
               + 2 * 5 * tk * tn * pb                # w_mu/w_rho/w_theta/logit_u/eps
               + 2 * 5 * tn * pb                     # bias row streams
               + 2 * tb * tn * 4                     # output tile
               + tb * tn * 4 + tn * 4)               # f32 accumulator + KL scratch
        if est <= vmem_budget_bytes:
            break
        if x_resident and 2 * tb * din_p * xb > vmem_budget_bytes // 3:
            x_resident = False                       # fall back to streamed X tiles
        elif tk > 128:
            blk_k = max(128, tk // 2)
        elif tn > 128:
            blk_n = max(128, tn // 2)
        elif tb > 8:
            blk_b = max(8, tb // 2)
        else:
            break
    vmem_limit_bytes = max(vmem_limit_bytes, int(1.5 * est) + (1 << 20))

    b_p = _round_up(b0, tb)
    nb, nj, nk = b_p // tb, dout_p // tn, din_p // tk

    # ---- pad + cast the streamed arrays (value-padding keeps the padded KL == 0) ----
    x_p = _pad2(x, b_p, din_p, 0.0, x_dtype)
    w_mu = _pad2(params["w_mu"], din_p, dout_p, 0.0, param_dtype)
    w_rho = _pad2(params["w_rho"], din_p, dout_p, rho_prior, param_dtype)
    w_theta = _pad2(params["w_theta"], din_p, dout_p, theta_pad, param_dtype)
    b_mu = _pad2(jnp.reshape(params["b_mu"], (1, -1)), 1, dout_p, 0.0, param_dtype)
    b_rho = _pad2(jnp.reshape(params["b_rho"], (1, -1)), 1, dout_p, rho_prior, param_dtype)
    b_theta = _pad2(jnp.reshape(params["b_theta"], (1, -1)), 1, dout_p, theta_pad, param_dtype)

    # Pre-fold the gate's two logs into one streamed array: logit(u).
    u_w = jnp.asarray(noise["u_w"], jnp.float32)
    u_b = jnp.reshape(jnp.asarray(noise["u_b"], jnp.float32), (1, -1))
    lu_w = _pad2(jnp.log(u_w) - jnp.log(1.0 - u_w), din_p, dout_p, 0.0, param_dtype)
    lu_b = _pad2(jnp.log(u_b) - jnp.log(1.0 - u_b), 1, dout_p, 0.0, param_dtype)
    eps_w = _pad2(noise["eps_w"], din_p, dout_p, 0.0, param_dtype)
    eps_b = _pad2(jnp.reshape(noise["eps_b"], (1, -1)), 1, dout_p, 0.0, param_dtype)

    # ---- specs ----
    if x_resident:
        x_spec = pl.BlockSpec((tb, din_p), lambda b, j, k: (b, 0))
    else:
        # very large B*Din fallback: X streamed per reduction step (re-fetched per j)
        x_spec = pl.BlockSpec((tb, tk), lambda b, j, k: (b, k))
    w_spec = pl.BlockSpec((tk, tn), lambda b, j, k: (k, j))
    r_spec = pl.BlockSpec((1, tn), lambda b, j, k: (0, j))

    in_specs = [x_spec, w_spec, w_spec, w_spec, w_spec, w_spec,
                r_spec, r_spec, r_spec, r_spec, r_spec]
    out_specs = (
        pl.BlockSpec((tb, tn), lambda b, j, k: (b, j)),
        pl.BlockSpec((1, 1), lambda b, j, k: (b, j),
                     memory_space=pltpu.MemorySpace.SMEM),
    )
    out_shape = (
        jax.ShapeDtypeStruct((b_p, dout_p), jnp.float32),
        jax.ShapeDtypeStruct((nb, nj), jnp.float32),
    )

    kernel = functools.partial(
        _mlp_layer_kernel,
        tile_k=tk, x_resident=x_resident, matmul_dtype=matmul_dtype, **consts)

    out_p, kl_parts = pl.pallas_call(
        kernel,
        out_shape=out_shape,
        grid_spec=pltpu.PrefetchScalarGridSpec(
            num_scalar_prefetch=0,
            grid=(nb, nj, nk),
            in_specs=in_specs,
            out_specs=out_specs,
            scratch_shapes=[pltpu.VMEM((tb, tn), jnp.float32),   # matmul accumulator
                            pltpu.VMEM((1, tn), jnp.float32)],   # weight-KL partial
        ),
        compiler_params=pltpu.CompilerParams(
            dimension_semantics=("parallel", "parallel", "arbitrary"),
            vmem_limit_bytes=int(vmem_limit_bytes),
        ),
    )(x_p, w_mu, w_rho, w_theta, lu_w, eps_w, b_mu, b_rho, b_theta, lu_b, eps_b)

    return out_p[:B, :Dout], jnp.sum(kl_parts)


# --------------------------------------------------------------------------- reference
def reference_forward(x, params, u_w, u_b, eps_w, eps_b, temp, phi_prior, rho_prior):
    """Pure-JAX reference mirroring the PyTorch forward."""
    sigma_w = jnp.log(1.0 + jnp.exp(params["w_rho"]))
    sigma_b = jnp.log(1.0 + jnp.exp(params["b_rho"]))
    sigma_prior = jnp.log(1.0 + jnp.exp(rho_prior))
    z_w = jax.nn.sigmoid((params["w_theta"] + jnp.log(u_w) - jnp.log(1 - u_w)) / temp)
    z_b = jax.nn.sigmoid((params["b_theta"] + jnp.log(u_b) - jnp.log(1 - u_b)) / temp)
    gamma_w = (z_w > 0.5).astype(jnp.float32)
    gamma_b = (z_b > 0.5).astype(jnp.float32)
    w = gamma_w * (params["w_mu"] + sigma_w * eps_w)
    b = gamma_b * (params["b_mu"] + sigma_b * eps_b)
    out = x @ w + b
    w_phi = jax.nn.sigmoid(params["w_theta"])
    b_phi = jax.nn.sigmoid(params["b_theta"])
    kl_w = (
        w_phi * (jnp.log(w_phi) - jnp.log(phi_prior))
        + (1 - w_phi) * (jnp.log(1 - w_phi) - jnp.log(1 - phi_prior))
        + w_phi * (jnp.log(sigma_prior) - jnp.log(sigma_w)
                   + 0.5 * (sigma_w ** 2 + params["w_mu"] ** 2) / sigma_prior ** 2 - 0.5)
    )
    kl_b = (
        b_phi * (jnp.log(b_phi) - jnp.log(phi_prior))
        + (1 - b_phi) * (jnp.log(1 - b_phi) - jnp.log(1 - phi_prior))
        + b_phi * (jnp.log(sigma_prior) - jnp.log(sigma_b)
                   + 0.5 * (sigma_b ** 2 + params["b_mu"] ** 2) / sigma_prior ** 2 - 0.5)
    )
    return out, jnp.sum(kl_w) + jnp.sum(kl_b)


# --------------------------------------------------------------------------- main
if __name__ == "__main__":
    rho0 = -6.0
    lambda0 = 0.99
    temp = 0.5
    phi_prior = 0.2
    rho_prior = -1.0

    def logit(p):
        return math.log(p / (1.0 - p))

    def make_inputs(key, B, Din, Dout):
        ks = jax.random.split(key, 7)
        params = {
            "w_mu": jax.random.uniform(ks[0], (Din, Dout), jnp.float32, -0.6, 0.6),
            "w_rho": jnp.full((Din, Dout), rho0, jnp.float32),
            "w_theta": jnp.full((Din, Dout), logit(lambda0), jnp.float32),
            "b_mu": jax.random.uniform(ks[1], (1, Dout), jnp.float32, -0.6, 0.6),
            "b_rho": jnp.full((1, Dout), rho0, jnp.float32),
            "b_theta": jnp.full((1, Dout), logit(lambda0), jnp.float32),
        }
        e = 1e-6
        noise = {
            "u_w": jax.random.uniform(ks[2], (Din, Dout), jnp.float32, e, 1.0 - e),
            "u_b": jax.random.uniform(ks[3], (1, Dout), jnp.float32, e, 1.0 - e),
            "eps_w": jax.random.normal(ks[4], (Din, Dout), jnp.float32),
            "eps_b": jax.random.normal(ks[5], (1, Dout), jnp.float32),
        }
        x = jax.random.normal(ks[6], (B, Din), jnp.float32)
        return x, params, noise

    key = jax.random.PRNGKey(0)
    k1, k2 = jax.random.split(key)

    # ---- test 1: small shapes, single-tile grid, f32 streaming, exact vs reference ----
    B, Din, Dout = 8, 32, 16
    x, params, noise = make_inputs(k1, B, Din, Dout)
    out, kl = mlp_layer_forward(x, params, temp, phi_prior, rho_prior, noise=noise,
                                param_dtype=jnp.float32, matmul_dtype=None)
    jax.block_until_ready((out, kl))
    out_r, kl_r = reference_forward(x, params, noise["u_w"], noise["u_b"],
                                    noise["eps_w"], noise["eps_b"],
                                    temp, phi_prior, rho_prior)
    assert out.shape == (B, Dout)
    assert jnp.allclose(out, out_r, rtol=1e-4, atol=1e-4)
    assert jnp.allclose(kl, kl_r, rtol=1e-4, atol=1e-2)

    # ---- test 2: multi-tile grid (nj=2, nk=3): accumulation, bias gating, padding ----
    B2, Din2, Dout2 = 24, 300, 200
    x2, params2, noise2 = make_inputs(k2, B2, Din2, Dout2)
    out2, kl2 = mlp_layer_forward(x2, params2, temp, phi_prior, rho_prior, noise=noise2,
                                  param_dtype=jnp.float32, matmul_dtype=None,
                                  block_k=128, block_n=128)
    jax.block_until_ready((out2, kl2))
    out2_r, kl2_r = reference_forward(x2, params2, noise2["u_w"], noise2["u_b"],
                                      noise2["eps_w"], noise2["eps_b"],
                                      temp, phi_prior, rho_prior)
    assert out2.shape == (B2, Dout2)
    assert jnp.allclose(out2, out2_r, rtol=1e-3, atol=1e-3)
    assert jnp.allclose(kl2, kl2_r, rtol=2e-4, atol=1e-2)

    # ---- test 3: batch tiling (nb=3): KL counted once, per-(b,j) output blocks ----
    out3, kl3 = mlp_layer_forward(x2, params2, temp, phi_prior, rho_prior, noise=noise2,
                                  param_dtype=jnp.float32, matmul_dtype=None,
                                  block_b=8, block_k=128, block_n=128)
    jax.block_until_ready((out3, kl3))
    assert out3.shape == (B2, Dout2)
    assert jnp.allclose(out3, out2_r, rtol=1e-3, atol=1e-3)
    assert jnp.allclose(kl3, kl2_r, rtol=2e-4, atol=1e-2)

    # ---- test 4: production defaults (bf16 streaming + bf16 MXU feed) ----
    out4, kl4 = mlp_layer_forward(x2, params2, temp, phi_prior, rho_prior, noise=noise2)
    jax.block_until_ready((out4, kl4))
    assert out4.shape == (B2, Dout2)
    assert bool(jnp.all(jnp.isfinite(out4)))
    # KL is noise-independent and only weakly affected by bf16 parameter rounding.
    assert jnp.allclose(kl4, kl2_r, rtol=2e-3)
    # Output sanity: bf16 streams/matmul stay within a few % in Frobenius norm.
    rel = jnp.linalg.norm(out4 - out2_r) / jnp.linalg.norm(out2_r)
    assert float(rel) < 0.1

    print("KERNEL_OK")
</pallas_src>

<mosaic_0001>
module attributes {stable_mosaic.version = 11 : i64} {
  func.func @_mlp_layer_kernel(%arg0: i32, %arg1: i32, %arg2: i32, %arg3: memref<8x128xf32, #tpu.memory_space<vmem>>, %arg4: memref<128x128xf32, #tpu.memory_space<vmem>>, %arg5: memref<128x128xf32, #tpu.memory_space<vmem>>, %arg6: memref<128x128xf32, #tpu.memory_space<vmem>>, %arg7: memref<128x128xf32, #tpu.memory_space<vmem>>, %arg8: memref<128x128xf32, #tpu.memory_space<vmem>>, %arg9: memref<1x128xf32, #tpu.memory_space<vmem>>, %arg10: memref<1x128xf32, #tpu.memory_space<vmem>>, %arg11: memref<1x128xf32, #tpu.memory_space<vmem>>, %arg12: memref<1x128xf32, #tpu.memory_space<vmem>>, %arg13: memref<1x128xf32, #tpu.memory_space<vmem>>, %arg14: memref<8x128xf32, #tpu.memory_space<vmem>>, %arg15: memref<1x1xf32, #tpu.memory_space<smem>>, %arg16: memref<8x128xf32, #tpu.memory_space<vmem>>, %arg17: memref<1x128xf32, #tpu.memory_space<vmem>>) attributes {dimension_semantics = [#tpu.dimension_semantics<parallel>, #tpu.dimension_semantics<parallel>, #tpu.dimension_semantics<arbitrary>], iteration_bounds = array<i64: 1, 1, 1>, scalar_prefetch = 0 : i64, scratch_operands = 2 : i64, tpu.core_type = #tpu.core_type<tc>, window_params = [{transform_indices = @transform_0, window_bounds = array<i64: 8, 128>}, {transform_indices = @transform_1, window_bounds = array<i64: 128, 128>}, {transform_indices = @transform_2, window_bounds = array<i64: 128, 128>}, {transform_indices = @transform_3, window_bounds = array<i64: 128, 128>}, {transform_indices = @transform_4, window_bounds = array<i64: 128, 128>}, {transform_indices = @transform_5, window_bounds = array<i64: 128, 128>}, {transform_indices = @transform_6, window_bounds = array<i64: 1, 128>}, {transform_indices = @transform_7, window_bounds = array<i64: 1, 128>}, {transform_indices = @transform_8, window_bounds = array<i64: 1, 128>}, {transform_indices = @transform_9, window_bounds = array<i64: 1, 128>}, {transform_indices = @transform_10, window_bounds = array<i64: 1, 128>}, {transform_indices = @transform_11, window_bounds = array<i64: 8, 128>}, {transform_indices = @transform_12, window_bounds = array<i64: 1, 1>}]} {
    %c0 = arith.constant 0 : index
    %c0_0 = arith.constant 0 : index
    %0 = vector.load %arg4[%c0, %c0_0] : memref<128x128xf32, #tpu.memory_space<vmem>>, vector<128x128xf32>
    %c0_1 = arith.constant 0 : index
    %c0_2 = arith.constant 0 : index
    %1 = vector.load %arg5[%c0_1, %c0_2] : memref<128x128xf32, #tpu.memory_space<vmem>>, vector<128x128xf32>
    %c0_3 = arith.constant 0 : index
    %c0_4 = arith.constant 0 : index
    %2 = vector.load %arg6[%c0_3, %c0_4] : memref<128x128xf32, #tpu.memory_space<vmem>>, vector<128x128xf32>
    %cst = arith.constant 0.000000e+00 : f32
    %3 = vector.broadcast %cst : f32 to vector<128x128xf32>
    %4 = arith.maximumf %1, %3 : vector<128x128xf32>
    %5 = math.absf %1 : vector<128x128xf32>
    %cst_5 = arith.constant 0.000000e+00 : f32
    %6 = vector.broadcast %cst_5 : f32 to vector<128x128xf32>
    %7 = arith.subf %6, %5 : vector<128x128xf32>
    %8 = math.exp %7 : vector<128x128xf32>
    %cst_6 = arith.constant 1.000000e+00 : f32
    %9 = vector.broadcast %cst_6 : f32 to vector<128x128xf32>
    %10 = arith.addf %9, %8 : vector<128x128xf32>
    %11 = math.log %10 : vector<128x128xf32>
    %12 = arith.addf %4, %11 : vector<128x128xf32>
    %c0_7 = arith.constant 0 : index
    %c0_8 = arith.constant 0 : index
    %13 = vector.load %arg7[%c0_7, %c0_8] : memref<128x128xf32, #tpu.memory_space<vmem>>, vector<128x128xf32>
    %14 = arith.addf %2, %13 : vector<128x128xf32>
    %cst_9 = arith.constant 0.000000e+00 : f32
    %15 = vector.broadcast %cst_9 : f32 to vector<128x128xf32>
    %16 = arith.cmpf ogt, %14, %15 : vector<128x128xf32>
    %17 = arith.extui %16 : vector<128x128xi1> to vector<128x128xi32>
    %18 = arith.sitofp %17 : vector<128x128xi32> to vector<128x128xf32>
    %c0_10 = arith.constant 0 : index
    %c0_11 = arith.constant 0 : index
    %19 = vector.load %arg8[%c0_10, %c0_11] : memref<128x128xf32, #tpu.memory_space<vmem>>, vector<128x128xf32>
    %20 = arith.mulf %12, %19 : vector<128x128xf32>
    %21 = arith.addf %0, %20 : vector<128x128xf32>
    %22 = arith.mulf %18, %21 : vector<128x128xf32>
    %c0_i32 = arith.constant 0 : i32
    %23 = arith.cmpi eq, %arg2, %c0_i32 : i32
    %24 = arith.extui %23 : i1 to i32
    %c0_i32_12 = arith.constant 0 : i32
    %25 = arith.cmpi ne, %24, %c0_i32_12 : i32
    scf.if %25 {
      %cst_25 = arith.constant 0.000000e+00 : f32
      %42 = vector.broadcast %cst_25 : f32 to vector<1x128xf32>
      %c0_26 = arith.constant 0 : index
      %c0_27 = arith.constant 0 : index
      %43 = vector.load %arg17[%c0_26, %c0_27] : memref<1x128xf32, #tpu.memory_space<vmem>>, vector<1x128xf32>
      tpu.vector_store %arg17[%c0_26, %c0_27], %42 {strides = array<i32>} : memref<1x128xf32, #tpu.memory_space<vmem>>, vector<1x128xf32>,
    } else {
    }
    %c0_i32_13 = arith.constant 0 : i32
    %26 = arith.cmpi eq, %arg0, %c0_i32_13 : i32
    %27 = arith.extui %26 : i1 to i32
    %c0_i32_14 = arith.constant 0 : i32
    %28 = arith.cmpi ne, %27, %c0_i32_14 : i32
    scf.if %28 {
      %42 = math.absf %2 : vector<128x128xf32>
      %cst_25 = arith.constant 0.000000e+00 : f32
      %43 = vector.broadcast %cst_25 : f32 to vector<128x128xf32>
      %44 = arith.subf %43, %42 : vector<128x128xf32>
      %45 = math.exp %44 : vector<128x128xf32>
      %cst_26 = arith.constant 1.000000e+00 : f32
      %46 = vector.broadcast %cst_26 : f32 to vector<128x128xf32>
      %47 = arith.addf %46, %45 : vector<128x128xf32>
      %48 = math.log %47 : vector<128x128xf32>
      %cst_27 = arith.constant 0.000000e+00 : f32
      %49 = vector.broadcast %cst_27 : f32 to vector<128x128xf32>
      %50 = arith.maximumf %2, %49 : vector<128x128xf32>
      %51 = arith.addf %50, %48 : vector<128x128xf32>
      %cst_28 = arith.constant 0.000000e+00 : f32
      %52 = vector.broadcast %cst_28 : f32 to vector<128x128xf32>
      %53 = arith.subf %52, %2 : vector<128x128xf32>
      %cst_29 = arith.constant 0.000000e+00 : f32
      %54 = vector.broadcast %cst_29 : f32 to vector<128x128xf32>
      %55 = arith.maximumf %53, %54 : vector<128x128xf32>
      %56 = arith.addf %55, %48 : vector<128x128xf32>
      %cst_30 = arith.constant 1.000000e+00 : f32
      %57 = vector.broadcast %cst_30 : f32 to vector<128x128xf32>
      %58 = arith.addf %57, %45 : vector<128x128xf32>
      %cst_31 = arith.constant 1.000000e+00 : f32
      %59 = vector.broadcast %cst_31 : f32 to vector<128x128xf32>
      %60 = arith.divf %59, %58 : vector<128x128xf32>
      %cst_32 = arith.constant 0.000000e+00 : f32
      %61 = vector.broadcast %cst_32 : f32 to vector<128x128xf32>
      %62 = arith.cmpf oge, %2, %61 : vector<128x128xf32>
      %63 = arith.mulf %45, %60 : vector<128x128xf32>
      %64 = arith.select %62, %60, %63 : vector<128x128xi1>, vector<128x128xf32>
      %cst_33 = arith.constant 0.000000e+00 : f32
      %65 = vector.broadcast %cst_33 : f32 to vector<128x128xf32>
      %66 = arith.subf %65, %56 : vector<128x128xf32>
      %cst_34 = arith.constant -1.60943794 : f32
      %67 = vector.broadcast %cst_34 : f32 to vector<128x128xf32>
      %68 = arith.subf %66, %67 : vector<128x128xf32>
      %69 = arith.mulf %64, %68 : vector<128x128xf32>
      %cst_35 = arith.constant 1.000000e+00 : f32
      %70 = vector.broadcast %cst_35 : f32 to vector<128x128xf32>
      %71 = arith.subf %70, %64 : vector<128x128xf32>
      %cst_36 = arith.constant 0.000000e+00 : f32
      %72 = vector.broadcast %cst_36 : f32 to vector<128x128xf32>
      %73 = arith.subf %72, %51 : vector<128x128xf32>
      %cst_37 = arith.constant -0.223143548 : f32
      %74 = vector.broadcast %cst_37 : f32 to vector<128x128xf32>
      %75 = arith.subf %73, %74 : vector<128x128xf32>
      %76 = arith.mulf %71, %75 : vector<128x128xf32>
      %77 = arith.addf %69, %76 : vector<128x128xf32>
      %78 = math.log %12 : vector<128x128xf32>
      %cst_38 = arith.constant -1.16071641 : f32
      %79 = vector.broadcast %cst_38 : f32 to vector<128x128xf32>
      %80 = arith.subf %79, %78 : vector<128x128xf32>
      %81 = arith.mulf %12, %12 : vector<128x128xf32>
      %82 = arith.mulf %0, %0 : vector<128x128xf32>
      %83 = arith.addf %81, %82 : vector<128x128xf32>
      %cst_39 = arith.constant 5.000000e-01 : f32
      %84 = vector.broadcast %cst_39 : f32 to vector<128x128xf32>
      %85 = arith.mulf %84, %83 : vector<128x128xf32>
      %cst_40 = arith.constant 10.1902637 : f32
      %86 = vector.broadcast %cst_40 : f32 to vector<128x128xf32>
      %87 = arith.mulf %85, %86 : vector<128x128xf32>
      %88 = arith.addf %80, %87 : vector<128x128xf32>
      %cst_41 = arith.constant 5.000000e-01 : f32
      %89 = vector.broadcast %cst_41 : f32 to vector<128x128xf32>
      %90 = arith.subf %88, %89 : vector<128x128xf32>
      %91 = arith.mulf %64, %90 : vector<128x128xf32>
      %92 = arith.addf %77, %91 : vector<128x128xf32>
      %c0_42 = arith.constant 0 : index
      %c0_43 = arith.constant 0 : index
      %93 = vector.load %arg17[%c0_42, %c0_43] : memref<1x128xf32, #tpu.memory_space<vmem>>, vector<1x128xf32>
      %cst_44 = arith.constant dense<0.000000e+00> : vector<128xf32>
      %94 = vector.multi_reduction <add>, %92, %cst_44 [0] : vector<128x128xf32> to vector<128xf32>
      %95 = vector.shape_cast %94 : vector<128xf32> to vector<1x128xf32>
      %96 = arith.addf %93, %95 : vector<1x128xf32>
      %c0_45 = arith.constant 0 : index
      %c0_46 = arith.constant 0 : index
      %97 = vector.load %arg17[%c0_45, %c0_46] : memref<1x128xf32, #tpu.memory_space<vmem>>, vector<1x128xf32>
      tpu.vector_store %arg17[%c0_45, %c0_46], %96 {strides = array<i32>} : memref<1x128xf32, #tpu.memory_space<vmem>>, vector<1x128xf32>,
    } else {
    }
    %c128_i32 = arith.constant 128 : i32
    %29 = arith.muli %arg2, %c128_i32 : i32
    %c0_15 = arith.constant 0 : index
    %30 = arith.index_cast %29 : i32 to index
    %31 = vector.load %arg3[%c0_15, %30] : memref<8x128xf32, #tpu.memory_space<vmem>>, vector<8x128xf32>
    %c0_i32_16 = arith.constant 0 : i32
    %32 = arith.cmpi eq, %arg2, %c0_i32_16 : i32
    %33 = arith.extui %32 : i1 to i32
    %c0_i32_17 = arith.constant 0 : i32
    %34 = arith.cmpi ne, %33, %c0_i32_17 : i32
    scf.if %34 {
      %cst_25 = arith.constant 0.000000e+00 : f32
      %42 = vector.broadcast %cst_25 : f32 to vector<8x128xf32>
      %c0_26 = arith.constant 0 : index
      %c0_27 = arith.constant 0 : index
      %43 = vector.load %arg16[%c0_26, %c0_27] : memref<8x128xf32, #tpu.memory_space<vmem>>, vector<8x128xf32>
      tpu.vector_store %arg16[%c0_26, %c0_27], %42 {strides = array<i32>} : memref<8x128xf32, #tpu.memory_space<vmem>>, vector<8x128xf32>,
    } else {
    }
    %c0_18 = arith.constant 0 : index
    %c0_19 = arith.constant 0 : index
    %35 = vector.load %arg16[%c0_18, %c0_19] : memref<8x128xf32, #tpu.memory_space<vmem>>, vector<8x128xf32>
    %cst_20 = arith.constant dense<0.000000e+00> : vector<8x128xf32>
    %36 = tpu.matmul %31, %22, %cst_20 {dimension_numbers = #tpu.dot_dimension_numbers<[1], [0], [0], [1], [0, 0, 1, 1], [], []>} : vector<8x128xf32>, vector<128x128xf32>, vector<8x128xf32> -> vector<8x128xf32>
    %37 = arith.addf %35, %36 : vector<8x128xf32>
    %c0_21 = arith.constant 0 : index
    %c0_22 = arith.constant 0 : index
    %38 = vector.load %arg16[%c0_21, %c0_22] : memref<8x128xf32, #tpu.memory_space<vmem>>, vector<8x128xf32>
    tpu.vector_store %arg16[%c0_21, %c0_22], %37 {strides = array<i32>} : memref<8x128xf32, #tpu.memory_space<vmem>>, vector<8x128xf32>,
    %c0_i32_23 = arith.constant 0 : i32
    %39 = arith.cmpi eq, %arg2, %c0_i32_23 : i32
    %40 = arith.extui %39 : i1 to i32
    %c0_i32_24 = arith.constant 0 : i32
    %41 = arith.cmpi ne, %40, %c0_i32_24 : i32
    scf.if %41 {
      %c0_25 = arith.constant 0 : index
      %c0_26 = arith.constant 0 : index
      %42 = vector.load %arg9[%c0_25, %c0_26] : memref<1x128xf32, #tpu.memory_space<vmem>>, vector<1x128xf32>
      %c0_27 = arith.constant 0 : index
      %c0_28 = arith.constant 0 : index
      %43 = vector.load %arg10[%c0_27, %c0_28] : memref<1x128xf32, #tpu.memory_space<vmem>>, vector<1x128xf32>
      %c0_29 = arith.constant 0 : index
      %c0_30 = arith.constant 0 : index
      %44 = vector.load %arg11[%c0_29, %c0_30] : memref<1x128xf32, #tpu.memory_space<vmem>>, vector<1x128xf32>
      %cst_31 = arith.constant 0.000000e+00 : f32
      %45 = vector.broadcast %cst_31 : f32 to vector<1x128xf32>
      %46 = arith.maximumf %43, %45 : vector<1x128xf32>
      %47 = math.absf %43 : vector<1x128xf32>
      %cst_32 = arith.constant 0.000000e+00 : f32
      %48 = vector.broadcast %cst_32 : f32 to vector<1x128xf32>
      %49 = arith.subf %48, %47 : vector<1x128xf32>
      %50 = math.exp %49 : vector<1x128xf32>
      %cst_33 = arith.constant 1.000000e+00 : f32
      %51 = vector.broadcast %cst_33 : f32 to vector<1x128xf32>
      %52 = arith.addf %51, %50 : vector<1x128xf32>
      %53 = math.log %52 : vector<1x128xf32>
      %54 = arith.addf %46, %53 : vector<1x128xf32>
      %c0_34 = arith.constant 0 : index
      %c0_35 = arith.constant 0 : index
      %55 = vector.load %arg12[%c0_34, %c0_35] : memref<1x128xf32, #tpu.memory_space<vmem>>, vector<1x128xf32>
      %56 = arith.addf %44, %55 : vector<1x128xf32>
      %cst_36 = arith.constant 0.000000e+00 : f32
      %57 = vector.broadcast %cst_36 : f32 to vector<1x128xf32>
      %58 = arith.cmpf ogt, %56, %57 : vector<1x128xf32>
      %59 = arith.extui %58 : vector<1x128xi1> to vector<1x128xi32>
      %60 = arith.sitofp %59 : vector<1x128xi32> to vector<1x128xf32>
      %c0_37 = arith.constant 0 : index
      %c0_38 = arith.constant 0 : index
      %61 = vector.load %arg13[%c0_37, %c0_38] : memref<1x128xf32, #tpu.memory_space<vmem>>, vector<1x128xf32>
      %62 = arith.mulf %54, %61 : vector<1x128xf32>
      %63 = arith.addf %42, %62 : vector<1x128xf32>
      %64 = arith.mulf %60, %63 : vector<1x128xf32>
      %c0_39 = arith.constant 0 : index
      %c0_40 = arith.constant 0 : index
      %65 = vector.load %arg16[%c0_39, %c0_40] : memref<8x128xf32, #tpu.memory_space<vmem>>, vector<8x128xf32>
      %66 = vector.broadcast %64 : vector<1x128xf32> to vector<8x128xf32>
      %67 = arith.addf %65, %66 : vector<8x128xf32>
      %c0_41 = arith.constant 0 : index
      %c0_42 = arith.constant 0 : index
      %68 = vector.load %arg14[%c0_41, %c0_42] : memref<8x128xf32, #tpu.memory_space<vmem>>, vector<8x128xf32>
      tpu.vector_store %arg14[%c0_41, %c0_42], %67 {strides = array<i32>} : memref<8x128xf32, #tpu.memory_space<vmem>>, vector<8x128xf32>,
      %69 = math.absf %44 : vector<1x128xf32>
      %cst_43 = arith.constant 0.000000e+00 : f32
      %70 = vector.broadcast %cst_43 : f32 to vector<1x128xf32>
      %71 = arith.subf %70, %69 : vector<1x128xf32>
      %72 = math.exp %71 : vector<1x128xf32>
      %cst_44 = arith.constant 1.000000e+00 : f32
      %73 = vector.broadcast %cst_44 : f32 to vector<1x128xf32>
      %74 = arith.addf %73, %72 : vector<1x128xf32>
      %75 = math.log %74 : vector<1x128xf32>
      %cst_45 = arith.constant 0.000000e+00 : f32
      %76 = vector.broadcast %cst_45 : f32 to vector<1x128xf32>
      %77 = arith.maximumf %44, %76 : vector<1x128xf32>
      %78 = arith.addf %77, %75 : vector<1x128xf32>
      %cst_46 = arith.constant 0.000000e+00 : f32
      %79 = vector.broadcast %cst_46 : f32 to vector<1x128xf32>
      %80 = arith.subf %79, %44 : vector<1x128xf32>
      %cst_47 = arith.constant 0.000000e+00 : f32
      %81 = vector.broadcast %cst_47 : f32 to vector<1x128xf32>
      %82 = arith.maximumf %80, %81 : vector<1x128xf32>
      %83 = arith.addf %82, %75 : vector<1x128xf32>
      %cst_48 = arith.constant 1.000000e+00 : f32
      %84 = vector.broadcast %cst_48 : f32 to vector<1x128xf32>
      %85 = arith.addf %84, %72 : vector<1x128xf32>
      %cst_49 = arith.constant 1.000000e+00 : f32
      %86 = vector.broadcast %cst_49 : f32 to vector<1x128xf32>
      %87 = arith.divf %86, %85 : vector<1x128xf32>
      %cst_50 = arith.constant 0.000000e+00 : f32
      %88 = vector.broadcast %cst_50 : f32 to vector<1x128xf32>
      %89 = arith.cmpf oge, %44, %88 : vector<1x128xf32>
      %90 = arith.mulf %72, %87 : vector<1x128xf32>
      %91 = arith.select %89, %87, %90 : vector<1x128xi1>, vector<1x128xf32>
      %cst_51 = arith.constant 0.000000e+00 : f32
      %92 = vector.broadcast %cst_51 : f32 to vector<1x128xf32>
      %93 = arith.subf %92, %83 : vector<1x128xf32>
      %cst_52 = arith.constant -1.60943794 : f32
      %94 = vector.broadcast %cst_52 : f32 to vector<1x128xf32>
      %95 = arith.subf %93, %94 : vector<1x128xf32>
      %96 = arith.mulf %91, %95 : vector<1x128xf32>
      %cst_53 = arith.constant 1.000000e+00 : f32
      %97 = vector.broadcast %cst_53 : f32 to vector<1x128xf32>
      %98 = arith.subf %97, %91 : vector<1x128xf32>
      %cst_54 = arith.constant 0.000000e+00 : f32
      %99 = vector.broadcast %cst_54 : f32 to vector<1x128xf32>
      %100 = arith.subf %99, %78 : vector<1x128xf32>
      %cst_55 = arith.constant -0.223143548 : f32
      %101 = vector.broadcast %cst_55 : f32 to vector<1x128xf32>
      %102 = arith.subf %100, %101 : vector<1x128xf32>
      %103 = arith.mulf %98, %102 : vector<1x128xf32>
      %104 = arith.addf %96, %103 : vector<1x128xf32>
      %105 = math.log %54 : vector<1x128xf32>
      %cst_56 = arith.constant -1.16071641 : f32
      %106 = vector.broadcast %cst_56 : f32 to vector<1x128xf32>
      %107 = arith.subf %106, %105 : vector<1x128xf32>
      %108 = arith.mulf %54, %54 : vector<1x128xf32>
      %109 = arith.mulf %42, %42 : vector<1x128xf32>
      %110 = arith.addf %108, %109 : vector<1x128xf32>
      %cst_57 = arith.constant 5.000000e-01 : f32
      %111 = vector.broadcast %cst_57 : f32 to vector<1x128xf32>
      %112 = arith.mulf %111, %110 : vector<1x128xf32>
      %cst_58 = arith.constant 10.1902637 : f32
      %113 = vector.broadcast %cst_58 : f32 to vector<1x128xf32>
      %114 = arith.mulf %112, %113 : vector<1x128xf32>
      %115 = arith.addf %107, %114 : vector<1x128xf32>
      %cst_59 = arith.constant 5.000000e-01 : f32
      %116 = vector.broadcast %cst_59 : f32 to vector<1x128xf32>
      %117 = arith.subf %115, %116 : vector<1x128xf32>
      %118 = arith.mulf %91, %117 : vector<1x128xf32>
      %119 = arith.addf %104, %118 : vector<1x128xf32>
      %c0_i32_60 = arith.constant 0 : i32
      %120 = arith.cmpi eq, %arg0, %c0_i32_60 : i32
      %c0_61 = arith.constant 0 : index
      %c0_62 = arith.constant 0 : index
      %121 = vector.load %arg17[%c0_61, %c0_62] : memref<1x128xf32, #tpu.memory_space<vmem>>, vector<1x128xf32>
      %122 = vector.shape_cast %121 : vector<1x128xf32> to vector<1x1x128xf32>
      %cst_63 = arith.constant dense<0.000000e+00> : vector<1xf32>
      %123 = vector.multi_reduction <add>, %122, %cst_63 [1, 2] : vector<1x1x128xf32> to vector<1xf32>
      %124 = vector.shape_cast %123 : vector<1xf32> to vector<1x1x1xf32>
      %125 = vector.extract %124[0, 0, 0] : f32 from vector<1x1x1xf32>
      %126 = vector.shape_cast %119 : vector<1x128xf32> to vector<1x1x128xf32>
      %cst_64 = arith.constant dense<0.000000e+00> : vector<1xf32>
      %127 = vector.multi_reduction <add>, %126, %cst_64 [1, 2] : vector<1x1x128xf32> to vector<1xf32>
      %128 = vector.shape_cast %127 : vector<1xf32> to vector<1x1x1xf32>
      %129 = vector.extract %128[0, 0, 0] : f32 from vector<1x1x1xf32>
      %130 = arith.addf %125, %129 : f32
      %cst_65 = arith.constant 0.000000e+00 : f32
      %131 = arith.select %120, %130, %cst_65 : f32
      %c0_66 = arith.constant 0 : index
      %c0_67 = arith.constant 0 : index
      %132 = memref.load %arg15[%c0_66, %c0_67] : memref<1x1xf32, #tpu.memory_space<smem>>
      memref.store %131, %arg15[%c0_66, %c0_67] : memref<1x1xf32, #tpu.memory_space<smem>>
    } else {
    }
    return
  }
  func.func @transform_0(%arg0: i32, %arg1: i32, %arg2: i32) -> (i32, i32) {
    %c0_i32 = arith.constant 0 : i32
    %c0_i32_0 = arith.constant 0 : i32
    return %arg0, %c0_i32 : i32, i32
  }
  func.func @transform_1(%arg0: i32, %arg1: i32, %arg2: i32) -> (i32, i32) {
    %c0_i32 = arith.constant 0 : i32
    return %arg2, %arg1 : i32, i32
  }
  func.func @transform_2(%arg0: i32, %arg1: i32, %arg2: i32) -> (i32, i32) {
    %c0_i32 = arith.constant 0 : i32
    return %arg2, %arg1 : i32, i32
  }
  func.func @transform_3(%arg0: i32, %arg1: i32, %arg2: i32) -> (i32, i32) {
    %c0_i32 = arith.constant 0 : i32
    return %arg2, %arg1 : i32, i32
  }
  func.func @transform_4(%arg0: i32, %arg1: i32, %arg2: i32) -> (i32, i32) {
    %c0_i32 = arith.constant 0 : i32
    return %arg2, %arg1 : i32, i32
  }
  func.func @transform_5(%arg0: i32, %arg1: i32, %arg2: i32) -> (i32, i32) {
    %c0_i32 = arith.constant 0 : i32
    return %arg2, %arg1 : i32, i32
  }
  func.func @transform_6(%arg0: i32, %arg1: i32, %arg2: i32) -> (i32, i32) {
    %c0_i32 = arith.constant 0 : i32
    %c0_i32_0 = arith.constant 0 : i32
    return %c0_i32, %arg1 : i32, i32
  }
  func.func @transform_7(%arg0: i32, %arg1: i32, %arg2: i32) -> (i32, i32) {
    %c0_i32 = arith.constant 0 : i32
    %c0_i32_0 = arith.constant 0 : i32
    return %c0_i32, %arg1 : i32, i32
  }
  func.func @transform_8(%arg0: i32, %arg1: i32, %arg2: i32) -> (i32, i32) {
    %c0_i32 = arith.constant 0 : i32
    %c0_i32_0 = arith.constant 0 : i32
    return %c0_i32, %arg1 : i32, i32
  }
  func.func @transform_9(%arg0: i32, %arg1: i32, %arg2: i32) -> (i32, i32) {
    %c0_i32 = arith.constant 0 : i32
    %c0_i32_0 = arith.constant 0 : i32
    return %c0_i32, %arg1 : i32, i32
  }
  func.func @transform_10(%arg0: i32, %arg1: i32, %arg2: i32) -> (i32, i32) {
    %c0_i32 = arith.constant 0 : i32
    %c0_i32_0 = arith.constant 0 : i32
    return %c0_i32, %arg1 : i32, i32
  }
  func.func @transform_11(%arg0: i32, %arg1: i32, %arg2: i32) -> (i32, i32) {
    %c0_i32 = arith.constant 0 : i32
    return %arg0, %arg1 : i32, i32
  }
  func.func @transform_12(%arg0: i32, %arg1: i32, %arg2: i32) -> (i32, i32) {
    %c0_i32 = arith.constant 0 : i32
    return %arg0, %arg1 : i32, i32
  }
}

</mosaic_0001>

<bundles_post_ra>
// kernel: tpu_custom_call.1
= control target key start
LH: loop header
LB: loop body
LE: loop exit
PB: predicated region body
PF: predicated region fallthrough
CT: control target
= control target key end

     0   :  { %18 = vsyncpa [#allocation5], 0  ;;  %s2869_s0 = inlined_call_operand.hbm [shape: f32[8,128], index: 0, kind: input, shape index: {}]   ;;  %s2870_s1 = inlined_call_operand.hbm [shape: f32[128,128], index: 1, kind: input, shape index: {}]   ;;  %s2871_s2 = inlined_call_operand.hbm [shape: f32[128,128], index: 2, kind: input, shape index: {}]   ;;  %s2872_s3 = inlined_call_operand.hbm [shape: f32[128,128], index: 3, kind: input, shape index: {}]   ;;  %s2873_s4 = inlined_call_operand.hbm [shape: f32[128,128], index: 4, kind: input, shape index: {}]   ;;  %s2874_s5 = inlined_call_operand.hbm [shape: f32[128,128], index: 5, kind: input, shape index: {}]   ;;  %s2875_s6 = inlined_call_operand.hbm [shape: f32[1,128], index: 6, kind: input, shape index: {}]   ;;  %s2876_s7 = inlined_call_operand.hbm [shape: f32[1,128], index: 7, kind: input, shape index: {}]   ;;  %s2877_s8 = inlined_call_operand.hbm [shape: f32[1,128], index: 8, kind: input, shape index: {}]   ;;  %s2878_s9 = inlined_call_operand.hbm [shape: f32[1,128], index: 9, kind: input, shape index: {}]   ;;  %s2879_s10 = inlined_call_operand.hbm [shape: f32[1,128], index: 10, kind: input, shape index: {}]   ;;  %s2880_s11 = inlined_call_operand.hbm [shape: f32[8,128], index: 11, kind: output, shape index: {0}]   ;;  %s2881_s12 = inlined_call_operand.hbm [shape: f32[1,1], index: 12, kind: output, shape index: {1}]  }
   0x1   :  { %19 = vsyncpa [#allocation9], 0 }
   0x2   :  { %20 = vsyncpa [#allocation12], 0 }
   0x3   :  { %21 = vsyncpa [#allocation15], 0 }
   0x4   :  { %22 = vsyncpa [#allocation18], 0 }
   0x5   :  { %23 = vsyncpa [#allocation21], 0 }
   0x6   :  { %24 = vsyncpa [#allocation6], 0 }
   0x7   :  { %25 = vsyncpa [#allocation7], 0  ;;  %s2012_s21 = smov [#allocation8]   ;;  %s1722_s25 = scalar_lea.hbm %s2870_s1, 2048 }
   0x8   :  { %s41_s22 = sshll.u32 %s2012_s21, 4  ;;  %p1723_p0 = scmp.ne.s32.totalorder %s2870_s1, %s1722_s25  ;;  %s42_s22 = int_to_ptr.vmem [resolvable:$true] %s41_s22 }
   0x9   :  { %p1726_p1 = scmp.lt.u32.totalorder %s1722_s25, %s2870_s1 }
   0xb   :  { %p1728_p2 = pnand %p1726_p1, %p1723_p0 }
   0xd   :  { %1731 = shalt.err (!%p1728_p2)
}
   0xe   :  { %s1732_s30 = scalar_lea.vmem %s42_s22, 2048  ;;  %p1737_p4 = scmp.lt.s32.totalorder %s42_s22, %s42_s22 }
   0xf   :  { %p1733_p3 = scmp.ne.s32.totalorder %s42_s22, %s1732_s30  ;;  %p1738_p5 = scmp.lt.s32.totalorder %s1732_s30, %s1732_s30 }
  0x11   :  { %p1739_p6 = por %p1738_p5, %p1737_p4 }
  0x13   :  { %p1740_p7 = pnand %p1739_p6, %p1733_p3 }
  0x15   :  { %1743 = shalt.err (!%p1740_p7)
}
  0x16   :  { %s2013_s13 = smov 128   ;;  %s2014_s14 = smov 8  }
  0x17   :  { %47 = dma.hbm_to_vmem [thread:$0]  %s2870_s1, 2048, %s42_s22, [#allocation9], %s2013_s13, %s2013_s13, %s2014_s14  }
  0x18   :  { %s2015_s17 = smov [#allocation11]   ;;  %s2016_s19 = smov [#allocation14]  }
  0x19   :  { %s65_s18 = sshll.u32 %s2015_s17, 4  ;;  %s89_s20 = sshll.u32 %s2016_s19, 4  ;;  %s66_s18 = int_to_ptr.vmem [resolvable:$true] %s65_s18  ;;  %s90_s20 = int_to_ptr.vmem [resolvable:$true] %s89_s20 }
  0x1a   :  { %s1744_s24 = scalar_lea.hbm %s2872_s3, 2048 }
  0x1b   :  { %p1745_p8 = scmp.ne.s32.totalorder %s2872_s3, %s1744_s24  ;;  %p1748_p9 = scmp.lt.u32.totalorder %s1744_s24, %s2872_s3 }
  0x1d   :  { %p1750_p10 = pnand %p1748_p9, %p1745_p8 }
  0x1f   :  { %1753 = shalt.err (!%p1750_p10)
}
  0x20   :  { %s1754_s1 = scalar_lea.vmem %s66_s18, 2048  ;;  %p1759_p12 = scmp.lt.s32.totalorder %s66_s18, %s66_s18 }
  0x21   :  { %p1755_p11 = scmp.ne.s32.totalorder %s66_s18, %s1754_s1  ;;  %p1760_p13 = scmp.lt.s32.totalorder %s1754_s1, %s1754_s1 }
  0x23   :  { %p1761_p0 = por %p1760_p13, %p1759_p12 }
  0x25   :  { %p1762_p1 = pnand %p1761_p0, %p1755_p11 }
  0x27   :  { %1765 = shalt.err (!%p1762_p1)
}
  0x28   :  { %71 = dma.hbm_to_vmem [thread:$0]  %s2872_s3, 2048, %s66_s18, [#allocation12], %s2013_s13, %s2013_s13, %s2014_s14  }
  0x29   :  { %s1766_s16 = scalar_lea.hbm %s2874_s5, 2048 }
  0x2a   :  { %p1767_p2 = scmp.ne.s32.totalorder %s2874_s5, %s1766_s16  ;;  %p1770_p3 = scmp.lt.u32.totalorder %s1766_s16, %s2874_s5 }
  0x2c   :  { %p1772_p4 = pnand %p1770_p3, %p1767_p2 }
  0x2e   :  { %1775 = shalt.err (!%p1772_p4)
}
  0x2f   :  { %s1776_s24 = scalar_lea.vmem %s90_s20, 2048  ;;  %p1781_p6 = scmp.lt.s32.totalorder %s90_s20, %s90_s20 }
  0x30   :  { %p1777_p5 = scmp.ne.s32.totalorder %s90_s20, %s1776_s24  ;;  %p1782_p7 = scmp.lt.s32.totalorder %s1776_s24, %s1776_s24 }
  0x32   :  { %p1783_p8 = por %p1782_p7, %p1781_p6 }
  0x34   :  { %p1784_p9 = pnand %p1783_p8, %p1777_p5 }
  0x36   :  { %1787 = shalt.err (!%p1784_p9)
}
  0x37   :  { %95 = dma.hbm_to_vmem [thread:$0]  %s2874_s5, 2048, %s90_s20, [#allocation15], %s2013_s13, %s2013_s13, %s2014_s14  }
  0x38   :  { %s2017_s25 = smov [#allocation17]   ;;  %s2018_s27 = smov [#allocation20]  }
  0x39   :  { %s112_s26 = sshll.u32 %s2017_s25, 4  ;;  %s132_s28 = sshll.u32 %s2018_s27, 4  ;;  %s113_s26 = int_to_ptr.vmem [resolvable:$true] %s112_s26  ;;  %s133_s28 = int_to_ptr.vmem [resolvable:$true] %s132_s28 }
  0x3a   :  { %s1788_s29 = scalar_lea.hbm %s2876_s7, 16 }
  0x3b   :  { %p1789_p10 = scmp.ne.s32.totalorder %s2876_s7, %s1788_s29  ;;  %p1792_p11 = scmp.lt.u32.totalorder %s1788_s29, %s2876_s7 }
  0x3d   :  { %p1794_p12 = pnand %p1792_p11, %p1789_p10 }
  0x3f   :  { %1797 = shalt.err (!%p1794_p12)
}
  0x40   :  { %s1798_s5 = scalar_lea.vmem %s113_s26, 16  ;;  %s1802_s20 = scalar_lea.vmem %s113_s26, 32 }
  0x41   :  { %p1799_p13 = scmp.ne.s32.totalorder %s113_s26, %s1798_s5  ;;  %p1803_p0 = scmp.lt.s32.totalorder %s113_s26, %s113_s26 }
  0x42   :  { %p1804_p1 = scmp.lt.s32.totalorder %s1802_s20, %s1798_s5 }
  0x44   :  { %p1805_p2 = por %p1804_p1, %p1803_p0 }
  0x46   :  { %p1806_p3 = pnand %p1805_p2, %p1799_p13 }
  0x48   :  { %1809 = shalt.err (!%p1806_p3)
}
  0x49   :  { %115 = dma.hbm_to_vmem [thread:$0]  %s2876_s7, 16, %s113_s26, [#allocation18]  }
  0x4a   :  { %s1810_s3 = scalar_lea.hbm %s2878_s9, 16 }
  0x4b   :  { %p1811_p4 = scmp.ne.s32.totalorder %s2878_s9, %s1810_s3  ;;  %p1814_p5 = scmp.lt.u32.totalorder %s1810_s3, %s2878_s9 }
  0x4d   :  { %p1816_p6 = pnand %p1814_p5, %p1811_p4 }
  0x4f   :  { %1819 = shalt.err (!%p1816_p6)
}
  0x50   :  { %s1820_s22 = scalar_lea.vmem %s133_s28, 16  ;;  %s1824_s29 = scalar_lea.vmem %s133_s28, 32 }
  0x51   :  { %p1821_p7 = scmp.ne.s32.totalorder %s133_s28, %s1820_s22  ;;  %p1825_p8 = scmp.lt.s32.totalorder %s133_s28, %s133_s28 }
  0x52   :  { %p1826_p9 = scmp.lt.s32.totalorder %s1824_s29, %s1820_s22 }
  0x54   :  { %p1827_p10 = por %p1826_p9, %p1825_p8 }
  0x56   :  { %p1828_p11 = pnand %p1827_p10, %p1821_p7 }
  0x58   :  { %1831 = shalt.err (!%p1828_p11)
}
  0x59   :  { %135 = dma.hbm_to_vmem [thread:$0]  %s2878_s9, 16, %s133_s28, [#allocation21]  }
  0x5a   :  { %s2019_s30 = smov [#allocation4]   ;;  %s2020_s16 = smov [#allocation10]  }
  0x5b   :  { %s32_s15 = sshll.u32 %s2019_s30, 4  ;;  %s53_s17 = sshll.u32 %s2020_s16, 4  ;;  %s33_s15 = int_to_ptr.vmem [resolvable:$true] %s32_s15  ;;  %s54_s17 = int_to_ptr.vmem [resolvable:$true] %s53_s17 }
  0x5c   :  { %s1832_s19 = scalar_lea.hbm %s2869_s0, 128 }
  0x5d   :  { %p1833_p12 = scmp.ne.s32.totalorder %s2869_s0, %s1832_s19  ;;  %p1836_p13 = scmp.lt.u32.totalorder %s1832_s19, %s2869_s0 }
  0x5f   :  { %p1838_p0 = pnand %p1836_p13, %p1833_p12 }
  0x61   :  { %1841 = shalt.err (!%p1838_p0)
}
  0x62   :  { %s1842_s9 = scalar_lea.vmem %s33_s15, 128  ;;  %p1847_p2 = scmp.lt.s32.totalorder %s33_s15, %s33_s15 }
  0x63   :  { %p1843_p1 = scmp.ne.s32.totalorder %s33_s15, %s1842_s9  ;;  %p1848_p3 = scmp.lt.s32.totalorder %s1842_s9, %s1842_s9 }
  0x65   :  { %p1849_p4 = por %p1848_p3, %p1847_p2 }
  0x67   :  { %p1850_p5 = pnand %p1849_p4, %p1843_p1 }
  0x69   :  { %1853 = shalt.err (!%p1850_p5)
}
  0x6a   :  { %35 = dma.hbm_to_vmem [thread:$0]  %s2869_s0, 128, %s33_s15, [#allocation5]  }
  0x6b   :  { %s1854_s1 = scalar_lea.hbm %s2871_s2, 2048 }
  0x6c   :  { %p1855_p6 = scmp.ne.s32.totalorder %s2871_s2, %s1854_s1  ;;  %p1858_p7 = scmp.lt.u32.totalorder %s1854_s1, %s2871_s2 }
  0x6e   :  { %p1860_p8 = pnand %p1858_p7, %p1855_p6 }
  0x70   :  { %1863 = shalt.err (!%p1860_p8)
}
  0x71   :  { %s1864_s30 = scalar_lea.vmem %s54_s17, 2048  ;;  %p1869_p10 = scmp.lt.s32.totalorder %s54_s17, %s54_s17 }
  0x72   :  { %p1865_p9 = scmp.ne.s32.totalorder %s54_s17, %s1864_s30  ;;  %p1870_p11 = scmp.lt.s32.totalorder %s1864_s30, %s1864_s30 }
  0x74   :  { %p1871_p12 = por %p1870_p11, %p1869_p10 }
  0x76   :  { %p1872_p13 = pnand %p1871_p12, %p1865_p9 }
  0x78   :  { %1875 = shalt.err (!%p1872_p13)
}
  0x79   :  { %59 = dma.hbm_to_vmem [thread:$0]  %s2871_s2, 2048, %s54_s17, [#allocation9], %s2013_s13, %s2013_s13, %s2014_s14  }
  0x7a   :  { %s2021_s16 = smov [#allocation13]   ;;  %s2022_s20 = smov [#allocation16]  }
  0x7b   :  { %s77_s5 = sshll.u32 %s2021_s16, 4  ;;  %s102_s19 = sshll.u32 %s2022_s20, 4  ;;  %s78_s5 = int_to_ptr.vmem [resolvable:$true] %s77_s5  ;;  %s103_s19 = int_to_ptr.vmem [resolvable:$true] %s102_s19 }
  0x7c   :  { %s1876_s24 = scalar_lea.hbm %s2873_s4, 2048 }
  0x7d   :  { %p1877_p0 = scmp.ne.s32.totalorder %s2873_s4, %s1876_s24  ;;  %p1880_p1 = scmp.lt.u32.totalorder %s1876_s24, %s2873_s4 }
  0x7f   :  { %p1882_p2 = pnand %p1880_p1, %p1877_p0 }
  0x81   :  { %1885 = shalt.err (!%p1882_p2)
}
  0x82   :  { %s1886_s2 = scalar_lea.vmem %s78_s5, 2048  ;;  %p1891_p4 = scmp.lt.s32.totalorder %s78_s5, %s78_s5 }
  0x83   :  { %p1887_p3 = scmp.ne.s32.totalorder %s78_s5, %s1886_s2  ;;  %p1892_p5 = scmp.lt.s32.totalorder %s1886_s2, %s1886_s2 }
  0x85   :  { %p1893_p6 = por %p1892_p5, %p1891_p4 }
  0x87   :  { %p1894_p7 = pnand %p1893_p6, %p1887_p3 }
  0x89   :  { %1897 = shalt.err (!%p1894_p7)
}
  0x8a   :  { %83 = dma.hbm_to_vmem [thread:$0]  %s2873_s4, 2048, %s78_s5, [#allocation12], %s2013_s13, %s2013_s13, %s2014_s14  }
  0x8b   :  { %s1898_s22 = scalar_lea.hbm %s2875_s6, 16 }
  0x8c   :  { %p1899_p8 = scmp.ne.s32.totalorder %s2875_s6, %s1898_s22  ;;  %p1902_p9 = scmp.lt.u32.totalorder %s1898_s22, %s2875_s6 }
  0x8e   :  { %p1904_p10 = pnand %p1902_p9, %p1899_p8 }
  0x90   :  { %1907 = shalt.err (!%p1904_p10)
}
  0x91   :  { %s1908_s0 = scalar_lea.vmem %s103_s19, 16  ;;  %s1912_s15 = scalar_lea.vmem %s103_s19, 32 }
  0x92   :  { %p1909_p11 = scmp.ne.s32.totalorder %s103_s19, %s1908_s0  ;;  %p1913_p12 = scmp.lt.s32.totalorder %s103_s19, %s103_s19 }
  0x93   :  { %p1914_p13 = scmp.lt.s32.totalorder %s1912_s15, %s1908_s0 }
  0x95   :  { %p1915_p0 = por %p1914_p13, %p1913_p12 }
  0x97   :  { %p1916_p1 = pnand %p1915_p0, %p1909_p11 }
  0x99   :  { %1919 = shalt.err (!%p1916_p1)
}
  0x9a   :  { %105 = dma.hbm_to_vmem [thread:$0]  %s2875_s6, 16, %s103_s19, [#allocation15]  }
  0x9b   :  { %s2023_s14 = smov [#allocation19]   ;;  %s2024_s5 = smov [#allocation22]  }
  0x9c   :  { %s122_s16 = sshll.u32 %s2023_s14, 4  ;;  %s142_s20 = sshll.u32 %s2024_s5, 4  ;;  %s123_s16 = int_to_ptr.vmem [resolvable:$true] %s122_s16  ;;  %s143_s20 = int_to_ptr.vmem [resolvable:$true] %s142_s20 }
  0x9d   :  { %s1920_s24 = scalar_lea.hbm %s2877_s8, 16 }
  0x9e   :  { %p1921_p2 = scmp.ne.s32.totalorder %s2877_s8, %s1920_s24  ;;  %p1924_p3 = scmp.lt.u32.totalorder %s1920_s24, %s2877_s8 }
  0xa0   :  { %p1926_p4 = pnand %p1924_p3, %p1921_p2 }
  0xa2   :  { %1929 = shalt.err (!%p1926_p4)
}
  0xa3   :  { %s1930_s6 = scalar_lea.vmem %s123_s16, 16  ;;  %s1934_s19 = scalar_lea.vmem %s123_s16, 32 }
  0xa4   :  { %p1931_p5 = scmp.ne.s32.totalorder %s123_s16, %s1930_s6  ;;  %p1935_p6 = scmp.lt.s32.totalorder %s123_s16, %s123_s16 }
  0xa5   :  { %p1936_p7 = scmp.lt.s32.totalorder %s1934_s19, %s1930_s6 }
  0xa7   :  { %p1937_p8 = por %p1936_p7, %p1935_p6 }
  0xa9   :  { %p1938_p9 = pnand %p1937_p8, %p1931_p5 }
  0xab   :  { %1941 = shalt.err (!%p1938_p9)
}
  0xac   :  { %125 = dma.hbm_to_vmem [thread:$0]  %s2877_s8, 16, %s123_s16, [#allocation18]  }
  0xad   :  { %s1942_s1 = scalar_lea.hbm %s2879_s10, 16 }
  0xae   :  { %p1943_p10 = scmp.ne.s32.totalorder %s2879_s10, %s1942_s1  ;;  %p1946_p11 = scmp.lt.u32.totalorder %s1942_s1, %s2879_s10 }
  0xb0   :  { %p1948_p12 = pnand %p1946_p11, %p1943_p10 }
  0xb2   :  { %1951 = shalt.err (!%p1948_p12)
}
  0xb3   :  { %s1952_s30 = scalar_lea.vmem %s143_s20, 16  ;;  %s1956_s0 = scalar_lea.vmem %s143_s20, 32 }
  0xb4   :  { %p1953_p13 = scmp.ne.s32.totalorder %s143_s20, %s1952_s30  ;;  %p1957_p0 = scmp.lt.s32.totalorder %s143_s20, %s143_s20 }
  0xb5   :  { %p1958_p1 = scmp.lt.s32.totalorder %s1956_s0, %s1952_s30 }
  0xb7   :  { %p1959_p2 = por %p1958_p1, %p1957_p0 }
  0xb9   :  { %p1960_p3 = pnand %p1959_p2, %p1953_p13 }
  0xbb   :  { %1963 = shalt.err (!%p1960_p3)
}
  0xbc   :  { %145 = dma.hbm_to_vmem [thread:$0]  %s2879_s10, 16, %s143_s20, [#allocation21]  }
  0xbd   :  { %1996 = dma.done.wait [#allocation5], 128  }
  0xbe   :  { %1997 = vsyncadd [#allocation5], 4294967168 }
  0xbf   :  { %1998 = dma.done.wait [#allocation9], 4096  }
  0xc0   :  { %1999 = vsyncadd [#allocation9], 4294963200 }
  0xc1   :  { %2000 = dma.done.wait [#allocation12], 4096  }
  0xc2   :  { %2001 = vsyncadd [#allocation12], 4294963200 }
  0xc3   :  { %2002 = dma.done.wait [#allocation15], 2064  }
  0xc4   :  { %2003 = vsyncadd [#allocation15], 4294965232 }
  0xc5   :  { %2004 = dma.done.wait [#allocation18], 32  }
  0xc6   :  { %2005 = vsyncadd [#allocation18], 4294967264 }
  0xc7   :  { %2006 = dma.done.wait [#allocation21], 32  }
  0xc8   :  { %2007 = vsyncadd [#allocation21], 4294967264  ;;  %v2025_v0 = vmov 0.0|0.0   ;;  %v2882_v1 = vmov 0.0   ;;  %v2244_v2 = vld [vmem:[#allocation10] sm:$0xff]  ;;  %v2246_v3 = vld [vmem:[#allocation10 + $0x8] sm:$0xff] }
  0xc9   :  { %1472 = vmatprep.subr.bf16.mxu0 %v2025_v0  ;;  %519 = vst [vmem:[#allocation3] sm:$0x1] %v2882_v1  ;;  %v2248_v4 = vld [vmem:[#allocation11] sm:$0xff]  ;;  %v2250_v5 = vld [vmem:[#allocation11 + $0x8] sm:$0xff]  ;;  %v243_v6 = vand.u32 2147483647, %v2244_v2 }
  0xca   :  { %v244_v7 = vand.u32 2147483647, %v2246_v3  ;;  %v524_v9 = vand.u32 2147483647, %v2248_v4  ;;  %v525_v11 = vand.u32 2147483647, %v2250_v5 }
  0xcb   :  { %v259_v8 = vsub.f32 0.0, %v243_v6  ;;  %v371_v15 = vld [vmem:[#allocation13] sm:$0xff]  ;;  %v372_v16 = vld [vmem:[#allocation13 + $0x8] sm:$0xff]  ;;  %v2256_v19 = vld [vmem:[#allocation10 + $0x10] sm:$0xff]  ;;  %v227_v32 = vmax.f32 %v2244_v2, 0.0  ;;  %v668_v40 = vsub.f32 0.0, %v2248_v4 }
  0xcc   :  { %v260_v10 = vsub.f32 0.0, %v244_v7  ;;  %v540_v13 = vsub.f32 0.0, %v524_v9  ;;  %v541_v17 = vsub.f32 0.0, %v525_v11  ;;  %v2258_v20 = vld [vmem:[#allocation10 + $0x18] sm:$0xff]  ;;  %v2260_v22 = vld [vmem:[#allocation11 + $0x10] sm:$0xff]  ;;  %v2264_v24 = vld [vmem:[#allocation8] sm:$0xff]  ;;  %v387_v25 = vadd.f32 %v371_v15, %v2248_v4 }
  0xcd   :  { %v275_v12 = vmul.f32 1.442695, %v259_v8  ;;  %v2262_v23 = vld [vmem:[#allocation11 + $0x18] sm:$0xff]  ;;  %v388_v26 = vadd.f32 %v372_v16, %v2250_v5  ;;  %v245_v27 = vand.u32 2147483647, %v2256_v19  ;;  %v2272_v31 = vld [vmem:[#allocation8 + $0x8] sm:$0xff]  ;;  %v2277_v33 = vmul.f32 %v2264_v24, %v2264_v24 }
  0xce   :  { %v277_v14 = vmul.f32 1.442695, %v260_v10  ;;  %v556_v18 = vmul.f32 1.442695, %v540_v13  ;;  %v558_v21 = vmul.f32 1.442695, %v541_v17  ;;  %v2284_v45 = vmul.f32 %v2272_v31, %v2272_v31 }
  0xcf   :  { %1518 = vpow2.f32 %v275_v12  ;;  %v246_v28 = vand.u32 2147483647, %v2258_v20  ;;  %v526_v29 = vand.u32 2147483647, %v2260_v22  ;;  %v527_v30 = vand.u32 2147483647, %v2262_v23 }
  0xd0   :  { %1520 = vpow2.f32 %v277_v14  ;;  %v261_v34 = vsub.f32 0.0, %v245_v27  ;;  %vm403_vm0 = vcmp.gt.f32.partialorder %v387_v25, 0.0  ;;  %vm404_vm1 = vcmp.gt.f32.partialorder %v388_v26, 0.0  ;;  %v373_v36 = vld [vmem:[#allocation13 + $0x10] sm:$0xff]  ;;  %v374_v37 = vld [vmem:[#allocation13 + $0x18] sm:$0xff]  ;;  %v2289_v51 = vld [vmem:[#allocation10 + $0x20] sm:$0xff] }
  0xd1   :  { %1522 = vpow2.f32 %v556_v18  ;;  %v262_v35 = vsub.f32 0.0, %v246_v28  ;;  %v542_v38 = vsub.f32 0.0, %v526_v29  ;;  %v543_v39 = vsub.f32 0.0, %v527_v30  ;;  %v2304_v60 = vld [vmem:[#allocation10 + $0x28] sm:$0xff]  ;;  %v2309_v6 = vld [vmem:[#allocation11 + $0x20] sm:$0xff]  ;;  %v2320_v18 = vld [vmem:[#allocation8 + $0x10] sm:$0xff] }
  0xd2   :  { %1524 = vpow2.f32 %v558_v21  ;;  %v669_v41 = vsub.f32 0.0, %v2250_v5  ;;  %v279_v42 = vmul.f32 1.442695, %v261_v34  ;;  %v228_v44 = vmax.f32 %v2246_v3, 0.0  ;;  %v375_v10 = vld [vmem:[#allocation13 + $0x20] sm:$0xff]  ;;  %v376_v14 = vld [vmem:[#allocation13 + $0x28] sm:$0xff] }
  0xd3   :  { %v281_v43 = vmul.f32 1.442695, %v262_v35  ;;  %v560_v46 = vmul.f32 1.442695, %v542_v38  ;;  %v562_v47 = vmul.f32 1.442695, %v543_v39  ;;  %v389_v49 = vadd.f32 %v373_v36, %v2260_v22 }
  0xd4   :  { %v636_v48 = vmax.f32 %v2248_v4, 0.0  ;;  %1526 = vpow2.f32 %v279_v42  ;;  %v390_v50 = vadd.f32 %v374_v37, %v2262_v23  ;;  %v2293_v53 = vsel %vm403_vm0, 1.0, %v2882_v1  ;;  %v2324_v26 = vld [vmem:[#allocation11 + $0x28] sm:$0xff]  ;;  %v2327_v28 = vld [vmem:[#allocation8 + $0x18] sm:$0xff]  ;;  %s2028_s10 = smov [#allocation23]  }
  0xd5   :  { %v2297_v54 = vsel %vm404_vm1, 1.0, %v2882_v1  ;;  %v637_v55 = vmax.f32 %v2250_v5, 0.0  ;;  %1528 = vpow2.f32 %v281_v43  ;;  %v2300_v58 = vmax.f32 %v668_v40, 0.0  ;;  %s1324_s4 = sshll.u32 %s2028_s10, 4  ;;  %s1325_s4 = int_to_ptr.vmem [resolvable:$true] %s1324_s4 }
  0xd6   :  { %v2302_v59 = vmax.f32 %v669_v41, 0.0  ;;  %1530 = vpow2.f32 %v560_v46  ;;  %v229_v63 = vmax.f32 %v2256_v19, 0.0  ;;  %v247_v7 = vand.u32 2147483647, %v2289_v51  ;;  %s1964_s13 = scalar_lea.vmem %s1325_s4, 128  ;;  %p1969_p5 = scmp.lt.s32.totalorder %s1325_s4, %s1325_s4 }
  0xd7   :  { %1532 = vpow2.f32 %v562_v47  ;;  %vm405_vm2 = vcmp.gt.f32.partialorder %v389_v49, 0.0  ;;  %vm406_vm3 = vcmp.gt.f32.partialorder %v390_v50, 0.0  ;;  %v248_v12 = vand.u32 2147483647, %v2304_v60  ;;  %p1965_p4 = scmp.ne.s32.totalorder %s1325_s4, %s1964_s13  ;;  %p1970_p6 = scmp.lt.s32.totalorder %s1964_s13, %s1964_s13 }
  0xd8   :  { %v263_v13 = vsub.f32 0.0, %v247_v7  ;;  %v670_v15 = vsub.f32 0.0, %v2260_v22  ;;  %v671_v16 = vsub.f32 0.0, %v2262_v23  ;;  %v528_v17 = vand.u32 2147483647, %v2309_v6 }
  0xd9   :  { %v1519_v52 = vpop.eup %1518  ;;  %v230_v21 = vmax.f32 %v2258_v20, 0.0  ;;  %v638_v25 = vmax.f32 %v2260_v22, 0.0  ;;  %v391_v27 = vadd.f32 %v375_v10, %v2309_v6  ;;  %v392_v34 = vadd.f32 %v376_v14, %v2324_v26  ;;  %p1971_p7 = por %p1970_p6, %p1969_p5 }
  0xda   :  { %v1521_v56 = vpop.eup %1520  ;;  %v307_v57 = vadd.f32 1.0, %v1519_v52  ;;  %v283_v30 = vmul.f32 1.442695, %v263_v13  ;;  %v2333_v35 = vsel %vm405_vm2, 1.0, %v2882_v1  ;;  %v2337_v36 = vsel %vm406_vm3, 1.0, %v2882_v1 }
  0xdb   :  { %v2306_v61 = vpop.eup %1522  ;;  %v308_v62 = vadd.f32 1.0, %v1521_v56  ;;  %v264_v37 = vsub.f32 0.0, %v248_v12  ;;  %vm748_vm4 = vcmp.ge.f32.partialorder %v2248_v4, 0.0  ;;  %v2340_v39 = vmax.f32 %v670_v15, 0.0  ;;  %p1972_p8 = pnand %p1971_p7, %p1965_p4 }
  0xdc   :  { %v2312_v8 = vpop.eup %1524  ;;  %1534 = vlog2.f32 %v307_v57  ;;  %v588_v9 = vadd.f32 1.0, %v2306_v61  ;;  %v2342_v40 = vmax.f32 %v671_v16, 0.0  ;;  %v2346_v41 = vmul.f32 %v2320_v18, %v2320_v18 }
  0xdd   :  { %1536 = vlog2.f32 %v308_v62  ;;  %v589_v11 = vadd.f32 1.0, %v2312_v8  ;;  %v544_v42 = vsub.f32 0.0, %v528_v17  ;;  %vm749_vm5 = vcmp.ge.f32.partialorder %v2250_v5, 0.0 }
  0xde   :  { %1538 = vlog2.f32 %v588_v9  ;;  %v1527_v38 = vpop.eup %1526  ;;  %v2351_v47 = vmul.f32 %v2327_v28, %v2327_v28  ;;  %vm407_vm6 = vcmp.gt.f32.partialorder %v391_v27, 0.0  ;;  %vm408_vm7 = vcmp.gt.f32.partialorder %v392_v34, 0.0  ;;  %v451_v34 = vld [vmem:[#allocation14] sm:$0xff] }
  0xdf   :  { %1540 = vlog2.f32 %v589_v11  ;;  %v1529_v43 = vpop.eup %1528  ;;  %v309_v46 = vadd.f32 1.0, %v1527_v38  ;;  %v285_v7 = vmul.f32 1.442695, %v264_v37  ;;  %v2363_v12 = vsel %vm407_vm6, 1.0, %v2882_v1 }
  0xe0   :  { %1542 = vrcp.f32 %v588_v9  ;;  %v2354_v50 = vpop.eup %1530  ;;  %v310_v52 = vadd.f32 1.0, %v1529_v43  ;;  %v529_v9 = vand.u32 2147483647, %v2324_v26  ;;  %v564_v13 = vmul.f32 1.442695, %v544_v42 }
  0xe1   :  { %1544 = vrcp.f32 %v589_v11  ;;  %v2357_v57 = vpop.eup %1532  ;;  %v590_v62 = vadd.f32 1.0, %v2354_v50  ;;  %v2366_v16 = vsel %vm408_vm7, 1.0, %v2882_v1  ;;  %v672_v38 = vsub.f32 0.0, %v2309_v6 }
  0xe2   :  { %1546 = vpow2.f32 %v283_v30  ;;  %v591_v11 = vadd.f32 1.0, %v2357_v57  ;;  %vm750_vm8 = vcmp.ge.f32.partialorder %v2260_v22, 0.0  ;;  %vm751_vm9 = vcmp.ge.f32.partialorder %v2262_v23, 0.0 }
  0xe3   :  { %1548 = vlog2.f32 %v309_v46  ;;  %v452_v46 = vld [vmem:[#allocation14 + $0x8] sm:$0xff]  ;;  %v2397_v4 = vmax.f32 %v672_v38, 0.0  ;;  %vm752_vm12 = vcmp.ge.f32.partialorder %v2309_v6, 0.0  ;;  %vm753_vm13 = vcmp.ge.f32.partialorder %v2324_v26, 0.0 }
  0xe4   :  { %1550 = vlog2.f32 %v310_v52 }
  0xe5   :  { %1552 = vlog2.f32 %v590_v62 }
  0xe6   :  { %v1535_v10 = vpop.eup %1534  ;;  %1554 = vlog2.f32 %v591_v11 }
  0xe7   :  { %v1537_v14 = vpop.eup %1536  ;;  %v324_v15 = vmul.f32 0.6931472, %v1535_v10  ;;  %1556 = vpow2.f32 %v285_v7  ;;  %v545_v10 = vsub.f32 0.0, %v529_v9 }
  0xe8   :  { %v1539_v27 = vpop.eup %1538  ;;  %v326_v30 = vmul.f32 0.6931472, %v1537_v14  ;;  %1558 = vpow2.f32 %v564_v13  ;;  %v673_v14 = vsub.f32 0.0, %v2324_v26 }
  0xe9   :  { %v1541_v43 = vpop.eup %1540  ;;  %v355_v42 = vadd.f32 %v324_v15, %v227_v32  ;;  %v605_v52 = vmul.f32 0.6931472, %v1539_v27  ;;  %1560 = vrcp.f32 %v590_v62 }
  0xea   :  { %v1543_v56 = vpop.eup %1542  ;;  %v356_v17 = vadd.f32 %v326_v30, %v228_v44  ;;  %v607_v49 = vmul.f32 0.6931472, %v1541_v43  ;;  %1562 = vrcp.f32 %v591_v11  ;;  %v2430_v20 = vmax.f32 %v673_v14, 0.0 }
  0xeb   :  { %v1545_v1 = vpop.eup %1544  ;;  %v467_v37 = vmul.f32 %v451_v34, %v355_v42  ;;  %v652_v29 = vadd.f32 %v636_v48, %v605_v52  ;;  %v700_v2 = vadd.f32 %v2300_v58, %v605_v52  ;;  %v764_v32 = vmul.f32 %v1543_v56, %v2306_v61 }
  0xec   :  { %v468_v15 = vmul.f32 %v452_v46, %v356_v17  ;;  %v653_v7 = vadd.f32 %v637_v55, %v607_v49  ;;  %v701_v3 = vadd.f32 %v2302_v59, %v607_v49  ;;  %v765_v44 = vmul.f32 %v1545_v1, %v2312_v8  ;;  %v2389_v48 = vpop.eup %1546 }
  0xed   :  { %v483_v9 = vadd.f32 %v467_v37, %v2264_v24  ;;  %v2387_v13 = vsel %vm748_vm4, %v1543_v56, %v764_v32  ;;  %v796_v27 = vsub.f32 0.0, %v700_v2  ;;  %v860_v59 = vsub.f32 0.0, %v652_v29  ;;  %v1549_v49 = vpop.eup %1548  ;;  %v2402_v37 = vld [vmem:[#allocation10 + $0x30] sm:$0xff]  ;;  %v454_v2 = vld [vmem:[#allocation14 + $0x18] sm:$0xff] }
  0xee   :  { %v484_v58 = vadd.f32 %v468_v15, %v2272_v31  ;;  %v2394_v61 = vsel %vm749_vm5, %v1545_v1, %v765_v44  ;;  %v797_v55 = vsub.f32 0.0, %v701_v3  ;;  %v861_v24 = vsub.f32 0.0, %v653_v7  ;;  %v1551_v56 = vpop.eup %1550 }
  0xef   :  { %v499_v8 = vmul.f32 %v2293_v53, %v483_v9  ;;  %v1368_v30 = vadd.f32 1.609438, %v796_v27  ;;  %v844_v34 = vsub.f32 1.0, %v2387_v13  ;;  %1564 = vlog2.f32 %v355_v42  ;;  %v1553_v31 = vpop.eup %1552  ;;  %v2404_v53 = vld [vmem:[#allocation10 + $0x38] sm:$0xff] }
  0xf0   :  { %v500_v62 = vmul.f32 %v2297_v54, %v484_v58  ;;  %v1369_v5 = vadd.f32 1.609438, %v797_v55  ;;  %v845_v1 = vsub.f32 1.0, %v2394_v61  ;;  %1566 = vlog2.f32 %v356_v17  ;;  %v1555_v11 = vpop.eup %1554  ;;  %v453_v54 = vld [vmem:[#allocation14 + $0x10] sm:$0xff] }
  0xf1   :  { %v972_v29 = vmul.f32 %v355_v42, %v355_v42  ;;  %v1384_v38 = vadd.f32 0.22314355, %v860_v59  ;;  %v1385_v43 = vadd.f32 0.22314355, %v861_v24  ;;  %v973_v46 = vmul.f32 %v356_v17, %v356_v17  ;;  %v2406_v32 = vpop.eup %1556 }
  0xf2   :  { %v1473_v52 = vpack.c.bf16 %v500_v62, %v499_v8  ;;  %v328_v7 = vmul.f32 0.6931472, %v1549_v49  ;;  %v330_v3 = vmul.f32 0.6931472, %v1551_v56  ;;  %v2409_v44 = vmul.f32 1.442695, %v545_v10  ;;  %v2411_v42 = vpop.eup %1558 }
  0xf3   :  { %v1004_v15 = vadd.f32 %v2277_v33, %v972_v29  ;;  %v1005_v9 = vadd.f32 %v2284_v45, %v973_v46  ;;  %v609_v27 = vmul.f32 0.6931472, %v1553_v31  ;;  %v249_v17 = vand.u32 2147483647, %v2402_v37  ;;  %v2423_v45 = vld [vmem:[#allocation8 + $0x20] sm:$0xff]  ;;  %v377_v49 = vld [vmem:[#allocation13 + $0x30] sm:$0xff] }
  0xf4   :  { %1474 = vmatpush3.bf16.msra.mxu0 %v1473_v52  ;;  %v250_v58 = vand.u32 2147483647, %v2404_v53  ;;  %v828_v55 = vmul.f32 %v1368_v30, %v2387_v13  ;;  %v357_v33 = vadd.f32 %v328_v7, %v229_v63  ;;  %v358_v10 = vadd.f32 %v330_v3, %v230_v21  ;;  %v1561_v30 = vpop.eup %1560  ;;  %v2432_v63 = vld [vmem:[#allocation11 + $0x30] sm:$0xff] }
  0xf5   :  { %1475 = vmatprep.subr.bf16.mxu0 %v2025_v0  ;;  %v611_v59 = vmul.f32 0.6931472, %v1555_v11  ;;  %v829_v8 = vmul.f32 %v1369_v5, %v2394_v61  ;;  %v892_v24 = vmul.f32 %v1384_v38, %v844_v34  ;;  %v893_v56 = vmul.f32 %v1385_v43, %v845_v1  ;;  %v1563_v1 = vpop.eup %1562 }
  0xf6   :  { %v702_v62 = vadd.f32 %v2340_v39, %v609_v27  ;;  %v1020_v31 = vmul.f32 0.5, %v1004_v15  ;;  %v469_v29 = vmul.f32 %v453_v54, %v357_v33  ;;  %v470_v19 = vmul.f32 %v454_v2, %v358_v10 }
  0xf7   :  { %v1021_v21 = vmul.f32 0.5, %v1005_v9  ;;  %v2436_v5 = vmul.f32 %v2423_v45, %v2423_v45  ;;  %v265_v34 = vsub.f32 0.0, %v249_v17  ;;  %v2439_v39 = vadd.f32 %v377_v49, %v2432_v63 }
  0xf8   :  { %v485_v11 = vadd.f32 %v469_v29, %v2320_v18  ;;  %v486_v38 = vadd.f32 %v470_v19, %v2327_v28  ;;  %v703_v43 = vadd.f32 %v2342_v40, %v611_v59  ;;  %v798_v14 = vsub.f32 0.0, %v702_v62 }
  0xf9   :  { %v1565_v46 = vpop.eup %1564  ;;  %v908_v52 = vadd.f32 %v892_v24, %v828_v55  ;;  %v909_v54 = vadd.f32 %v893_v56, %v829_v8  ;;  %v654_v2 = vadd.f32 %v638_v25, %v609_v27  ;;  %v266_v15 = vsub.f32 0.0, %v250_v58 }
  0xfa   :  { %v1567_v7 = vpop.eup %1566  ;;  %v925_v3 = vmul.f32 0.6931472, %v1565_v46  ;;  %v1036_v9 = vmul.f32 10.190264, %v1020_v31  ;;  %v2884_v17 = vmax.f32 %v2262_v23, 0.0  ;;  %v766_v18 = vmul.f32 %v1561_v30, %v2354_v50  ;;  %v2471_v46 = vld [vmem:[#allocation11 + $0x38] sm:$0xff] }
  0xfb   :  { %v927_v29 = vmul.f32 0.6931472, %v1567_v7  ;;  %v1037_v28 = vmul.f32 10.190264, %v1021_v21  ;;  %v501_v40 = vmul.f32 %v2333_v35, %v485_v11  ;;  %v502_v62 = vmul.f32 %v2337_v36, %v486_v38 }
  0xfc   :  { %v655_v49 = vadd.f32 %v2884_v17, %v611_v59  ;;  %v956_v55 = vsub.f32 -1.1607164, %v925_v3  ;;  %v767_v8 = vmul.f32 %v1563_v1, %v2357_v57  ;;  %v799_v24 = vsub.f32 0.0, %v703_v43 }
  0xfd   :  { %v1370_v25 = vadd.f32 1.609438, %v798_v14  ;;  %v957_v27 = vsub.f32 -1.1607164, %v927_v29  ;;  %1568 = vlog2.f32 %v357_v33  ;;  %v974_v58 = vmul.f32 %v357_v33, %v357_v33 }
  0xfe   :  { %v975_v56 = vmul.f32 %v358_v10, %v358_v10  ;;  %v1052_v31 = vadd.f32 %v1036_v9, %v956_v55  ;;  %v2454_v59 = vsel %vm750_vm8, %v1561_v30, %v766_v18  ;;  %v862_v50 = vsub.f32 0.0, %v654_v2  ;;  %v378_v9 = vld [vmem:[#allocation13 + $0x38] sm:$0xff] }
  0xff   :  { %1570 = vlog2.f32 %v358_v10  ;;  %v1053_v19 = vadd.f32 %v1037_v28, %v957_v27  ;;  %v1006_v35 = vadd.f32 %v2346_v41, %v974_v58  ;;  %v1476_v21 = vpack.c.bf16 %v502_v62, %v501_v40 }
 0x100   :  { %v1007_v36 = vadd.f32 %v2351_v47, %v975_v56  ;;  %v1400_v57 = vadd.f32 -0.5, %v1052_v31  ;;  %v2460_v11 = vsel %vm751_vm9, %v1563_v1, %v767_v8  ;;  %v863_v33 = vsub.f32 0.0, %v655_v49  ;;  %v184_v8 = vld [vmem:[#allocation8 + $0x28] sm:$0xff] }
 0x101   :  { %v311_v38 = vadd.f32 1.0, %v2389_v48  ;;  %v1401_v43 = vadd.f32 -0.5, %v1053_v19  ;;  %v1371_v22 = vadd.f32 1.609438, %v799_v24  ;;  %v830_v30 = vmul.f32 %v1370_v25, %v2454_v59  ;;  %1477 = vmatpush3.bf16.msra.mxu0 %v1476_v21 }
 0x102   :  { %v312_v10 = vadd.f32 1.0, %v2406_v32  ;;  %v1084_v41 = vmul.f32 %v1400_v57, %v2387_v13  ;;  %v846_v47 = vsub.f32 1.0, %v2454_v59  ;;  %1478 = vmatprep.subr.bf16.mxu0 %v2025_v0  ;;  %v592_v23 = vadd.f32 1.0, %v2411_v42 }
 0x103   :  { %1572 = vlog2.f32 %v311_v38  ;;  %v1085_v1 = vmul.f32 %v1401_v43, %v2394_v61  ;;  %v847_v48 = vsub.f32 1.0, %v2460_v11  ;;  %v1386_v14 = vadd.f32 0.22314355, %v862_v50 }
 0x104   :  { %1574 = vlog2.f32 %v312_v10  ;;  %v1100_v2 = vadd.f32 %v1084_v41, %v908_v52  ;;  %v1022_v7 = vmul.f32 0.5, %v1006_v35  ;;  %v1023_v32 = vmul.f32 0.5, %v1007_v36 }
 0x105   :  { %1576 = vpow2.f32 %v2409_v44  ;;  %v1101_v13 = vadd.f32 %v1085_v1, %v909_v54  ;;  %v287_v3 = vmul.f32 1.442695, %v265_v34  ;;  %v530_v17 = vand.u32 2147483647, %v2432_v63  ;;  %v455_v1 = vld [vmem:[#allocation14 + $0x20] sm:$0xff] }
 0x106   :  { %1578 = vlog2.f32 %v592_v23  ;;  %v831_v49 = vmul.f32 %v1371_v22, %v2460_v11  ;;  %v1387_v61 = vadd.f32 0.22314355, %v863_v33  ;;  %v289_v18 = vmul.f32 1.442695, %v266_v15 }
 0x107   :  { %v531_v29 = vand.u32 2147483647, %v2471_v46  ;;  %v1569_v28 = vpop.eup %1568  ;;  %v2477_v40 = vadd.f32 %v1101_v13, %v1100_v2  ;;  %v894_v52 = vmul.f32 %v1386_v14, %v846_v47  ;;  %1580 = vrcp.f32 %v592_v23  ;;  %v456_v13 = vld [vmem:[#allocation14 + $0x28] sm:$0xff] }
 0x108   :  { %v546_v62 = vsub.f32 0.0, %v530_v17  ;;  %v929_v44 = vmul.f32 0.6931472, %v1569_v28  ;;  %v1038_v54 = vmul.f32 10.190264, %v1022_v7  ;;  %v394_v34 = vadd.f32 %v378_v9, %v2471_v46 }
 0x109   :  { %v1571_v55 = vpop.eup %1570  ;;  %v547_v24 = vsub.f32 0.0, %v531_v29  ;;  %v1039_v27 = vmul.f32 10.190264, %v1023_v32  ;;  %1582 = vpow2.f32 %v287_v3  ;;  %v895_v15 = vmul.f32 %v1387_v61, %v847_v48 }
 0x10a   :  { %v931_v25 = vmul.f32 0.6931472, %v1571_v55  ;;  %v568_v58 = vmul.f32 1.442695, %v546_v62  ;;  %v958_v56 = vsub.f32 -1.1607164, %v929_v44  ;;  %1584 = vpow2.f32 %v289_v18 }
 0x10b   :  { %v570_v31 = vmul.f32 1.442695, %v547_v24  ;;  %v2480_v19 = vmul.f32 %v184_v8, %v184_v8  ;;  %vm409_vm10 = vcmp.gt.f32.partialorder %v2439_v39, 0.0  ;;  %v233_v21 = vmax.f32 %v2402_v37, 0.0  ;;  %v2506_v62 = vld [vmem:[#allocation10 + $0x40] sm:$0xff] }
 0x10c   :  { %v959_v50 = vsub.f32 -1.1607164, %v931_v25  ;;  %1586 = vpow2.f32 %v568_v58  ;;  %v1054_v36 = vadd.f32 %v1038_v54, %v958_v56  ;;  %v234_v57 = vmax.f32 %v2404_v53, 0.0  ;;  %v380_v53 = vld [vmem:[#allocation13 + $0x48] sm:$0xff] }
 0x10d   :  { %v1573_v35 = vpop.eup %1572  ;;  %vm410_vm11 = vcmp.gt.f32.partialorder %v394_v34, 0.0  ;;  %v910_v38 = vadd.f32 %v894_v52, %v830_v30  ;;  %1588 = vpow2.f32 %v570_v31  ;;  %v911_v41 = vadd.f32 %v895_v15, %v831_v49 }
 0x10e   :  { %v1575_v33 = vpop.eup %1574  ;;  %v1055_v43 = vadd.f32 %v1039_v27, %v959_v50  ;;  %v332_v22 = vmul.f32 0.6931472, %v1573_v35  ;;  %v1402_v47 = vadd.f32 -0.5, %v1054_v36  ;;  %v2885_v48 = vmov 0.0  }
 0x10f   :  { %v2485_v10 = vpop.eup %1576  ;;  %v334_v23 = vmul.f32 0.6931472, %v1575_v33  ;;  %v2491_v14 = vsel %vm409_vm10, 1.0, %v2885_v48  ;;  %v2886_v30 = vmax.f32 %v2289_v51, 0.0  ;;  %v2498_v9 = vsel %vm410_vm11, 1.0, %v2885_v48 }
 0x110   :  { %v1579_v2 = vpop.eup %1578  ;;  %v1403_v7 = vadd.f32 -0.5, %v1055_v43  ;;  %v593_v3 = vadd.f32 1.0, %v2485_v10  ;;  %v1086_v17 = vmul.f32 %v1402_v47, %v2454_v59  ;;  %v2887_v49 = vmax.f32 %v2304_v60, 0.0 }
 0x111   :  { %v359_v32 = vadd.f32 %v332_v22, %v2886_v30  ;;  %v613_v39 = vmul.f32 0.6931472, %v1579_v2  ;;  %v642_v18 = vmax.f32 %v2432_v63, 0.0  ;;  %v1581_v29 = vpop.eup %1580  ;;  %v643_v52 = vmax.f32 %v2471_v46, 0.0  ;;  %v2536_v30 = vld [vmem:[#allocation8 + $0x30] sm:$0xff] }
 0x112   :  { %v360_v61 = vadd.f32 %v334_v23, %v2887_v49  ;;  %v1087_v28 = vmul.f32 %v1403_v7, %v2460_v11  ;;  %1590 = vlog2.f32 %v593_v3  ;;  %v1102_v55 = vadd.f32 %v1086_v17, %v910_v38  ;;  %v2512_v11 = vld [vmem:[#allocation10 + $0x48] sm:$0xff] }
 0x113   :  { %v471_v51 = vmul.f32 %v455_v1, %v359_v32  ;;  %v674_v54 = vsub.f32 0.0, %v2432_v63  ;;  %v675_v59 = vsub.f32 0.0, %v2471_v46  ;;  %v1583_v60 = vpop.eup %1582  ;;  %v704_v25 = vadd.f32 %v2397_v4, %v613_v39 }
 0x114   :  { %v472_v44 = vmul.f32 %v456_v13, %v360_v61  ;;  %v1103_v34 = vadd.f32 %v1087_v28, %v911_v41  ;;  %1592 = vrcp.f32 %v593_v3  ;;  %v1585_v27 = vpop.eup %1584  ;;  %v1118_v58 = vadd.f32 %v2477_v40, %v1102_v55 }
 0x115   :  { %v487_v24 = vadd.f32 %v471_v51, %v2423_v45  ;;  %v768_v56 = vmul.f32 %v1581_v29, %v2411_v42  ;;  %v251_v31 = vand.u32 2147483647, %v2506_v62  ;;  %v2888_v36 = vmax.f32 %v2309_v6, 0.0 }
 0x116   :  { %v488_v15 = vadd.f32 %v472_v44, %v184_v8  ;;  %v2517_v50 = vpop.eup %1586  ;;  %1594 = vlog2.f32 %v359_v32  ;;  %v976_v4 = vmul.f32 %v359_v32, %v359_v32  ;;  %v2523_v33 = vadd.f32 %v1118_v58, %v1103_v34 }
 0x117   :  { %v503_v35 = vmul.f32 %v2363_v12, %v487_v24  ;;  %v656_v45 = vadd.f32 %v2888_v36, %v613_v39  ;;  %1596 = vlog2.f32 %v360_v61  ;;  %v252_v42 = vand.u32 2147483647, %v2512_v11  ;;  %v2527_v8 = vpop.eup %1588 }
 0x118   :  { %v504_v40 = vmul.f32 %v2366_v16, %v488_v15  ;;  %v800_v38 = vsub.f32 0.0, %v704_v25  ;;  %v977_v43 = vmul.f32 %v360_v61, %v360_v61  ;;  %v1008_v12 = vadd.f32 %v2436_v5, %v976_v4  ;;  %v2559_v4 = vld [vmem:[#allocation11 + $0x48] sm:$0xff] }
 0x119   :  { %v313_v22 = vadd.f32 1.0, %v1583_v60  ;;  %v314_v47 = vadd.f32 1.0, %v1585_v27  ;;  %v594_v23 = vadd.f32 1.0, %v2517_v50  ;;  %v267_v1 = vsub.f32 0.0, %v251_v31 }
 0x11a   :  { %v1479_v41 = vpack.c.bf16 %v504_v40, %v503_v35  ;;  %v2533_v2 = vsel %vm752_vm12, %v1581_v29, %v768_v56  ;;  %v864_v16 = vsub.f32 0.0, %v656_v45  ;;  %v1009_v7 = vadd.f32 %v2480_v19, %v977_v43  ;;  %v2549_v29 = vld [vmem:[#allocation11 + $0x40] sm:$0xff] }
 0x11b   :  { %1598 = vlog2.f32 %v313_v22  ;;  %v595_v5 = vadd.f32 1.0, %v2527_v8  ;;  %v2539_v32 = vmax.f32 %v674_v54, 0.0  ;;  %v2541_v13 = vmax.f32 %v675_v59, 0.0 }
 0x11c   :  { %1480 = vmatpush3.bf16.msra.mxu0 %v1479_v41  ;;  %1600 = vlog2.f32 %v314_v47  ;;  %v1591_v3 = vpop.eup %1590  ;;  %v1372_v17 = vadd.f32 1.609438, %v800_v38  ;;  %v1024_v49 = vmul.f32 0.5, %v1008_v12  ;;  %v268_v6 = vsub.f32 0.0, %v252_v42 }
 0x11d   :  { %1481 = vmatprep.subr.bf16.mxu0 %v2025_v0  ;;  %1602 = vlog2.f32 %v594_v23  ;;  %v615_v61 = vmul.f32 0.6931472, %v1591_v3  ;;  %v848_v19 = vsub.f32 1.0, %v2533_v2  ;;  %v2547_v39 = vmul.f32 %v2536_v30, %v2536_v30 }
 0x11e   :  { %1604 = vlog2.f32 %v595_v5  ;;  %v1593_v28 = vpop.eup %1592  ;;  %v1388_v51 = vadd.f32 0.22314355, %v864_v16  ;;  %v1025_v55 = vmul.f32 0.5, %v1009_v7  ;;  %v291_v44 = vmul.f32 1.442695, %v267_v1 }
 0x11f   :  { %1606 = vrcp.f32 %v594_v23  ;;  %v2889_v54 = vmax.f32 %v2324_v26, 0.0  ;;  %v705_v60 = vadd.f32 %v2430_v20, %v615_v61  ;;  %v769_v34 = vmul.f32 %v1593_v28, %v2485_v10 }
 0x120   :  { %1608 = vrcp.f32 %v595_v5  ;;  %v1595_v24 = vpop.eup %1594  ;;  %v832_v25 = vmul.f32 %v1372_v17, %v2533_v2  ;;  %v1040_v27 = vmul.f32 10.190264, %v1024_v49  ;;  %v293_v58 = vmul.f32 1.442695, %v268_v6 }
 0x121   :  { %v657_v59 = vadd.f32 %v2889_v54, %v615_v61  ;;  %v532_v15 = vand.u32 2147483647, %v2549_v29  ;;  %v1597_v56 = vpop.eup %1596  ;;  %v785_v31 = vsel %vm753_vm13, %v1593_v28, %v769_v34  ;;  %v801_v35 = vsub.f32 0.0, %v705_v60  ;;  %v457_v61 = vld [vmem:[#allocation14 + $0x30] sm:$0xff]  ;;  %v458_v54 = vld [vmem:[#allocation14 + $0x38] sm:$0xff] }
 0x122   :  { %v933_v45 = vmul.f32 0.6931472, %v1595_v24  ;;  %v849_v20 = vsub.f32 1.0, %v785_v31  ;;  %v896_v40 = vmul.f32 %v1388_v51, %v848_v19  ;;  %v935_v10 = vmul.f32 0.6931472, %v1597_v56 }
 0x123   :  { %v865_v36 = vsub.f32 0.0, %v657_v59  ;;  %v1041_v42 = vmul.f32 10.190264, %v1025_v55  ;;  %v1373_v38 = vadd.f32 1.609438, %v801_v35  ;;  %vm754_vm14 = vcmp.ge.f32.partialorder %v2432_v63, 0.0 }
 0x124   :  { %v960_v12 = vsub.f32 -1.1607164, %v933_v45  ;;  %1610 = vpow2.f32 %v291_v44  ;;  %v961_v41 = vsub.f32 -1.1607164, %v935_v10  ;;  %vm755_vm15 = vcmp.ge.f32.partialorder %v2471_v46, 0.0  ;;  %v186_v45 = vld [vmem:[#allocation8 + $0x38] sm:$0xff] }
 0x125   :  { %v1389_v43 = vadd.f32 0.22314355, %v865_v36  ;;  %v1599_v22 = vpop.eup %1598  ;;  %1612 = vpow2.f32 %v293_v58  ;;  %v533_v26 = vand.u32 2147483647, %v2559_v4  ;;  %v548_v47 = vsub.f32 0.0, %v532_v15 }
 0x126   :  { %v1601_v23 = vpop.eup %1600  ;;  %v833_v1 = vmul.f32 %v1373_v38, %v785_v31  ;;  %v1056_v7 = vadd.f32 %v1040_v27, %v960_v12  ;;  %v336_v5 = vmul.f32 0.6931472, %v1599_v22  ;;  %v912_v17 = vadd.f32 %v896_v40, %v832_v25  ;;  %v379_v40 = vld [vmem:[#allocation13 + $0x40] sm:$0xff] }
 0x127   :  { %v897_v16 = vmul.f32 %v1389_v43, %v849_v20  ;;  %v1603_v3 = vpop.eup %1602  ;;  %v1057_v49 = vadd.f32 %v1041_v42, %v961_v41  ;;  %v338_v6 = vmul.f32 0.6931472, %v1601_v23  ;;  %v572_v19 = vmul.f32 1.442695, %v548_v47 }
 0x128   :  { %v1605_v28 = vpop.eup %1604  ;;  %v1404_v55 = vadd.f32 -0.5, %v1056_v7  ;;  %v361_v44 = vadd.f32 %v336_v5, %v233_v21  ;;  %v617_v59 = vmul.f32 0.6931472, %v1603_v3  ;;  %v549_v35 = vsub.f32 0.0, %v533_v26 }
 0x129   :  { %v913_v51 = vadd.f32 %v897_v16, %v833_v1  ;;  %v1607_v60 = vpop.eup %1606  ;;  %v1405_v34 = vadd.f32 -0.5, %v1057_v49  ;;  %v362_v24 = vadd.f32 %v338_v6, %v234_v57  ;;  %v619_v27 = vmul.f32 0.6931472, %v1605_v28 }
 0x12a   :  { %1614 = vpow2.f32 %v572_v19  ;;  %v1609_v25 = vpop.eup %1608  ;;  %v1088_v58 = vmul.f32 %v1404_v55, %v2533_v2  ;;  %v473_v15 = vmul.f32 %v457_v61, %v361_v44  ;;  %v706_v56 = vadd.f32 %v2539_v32, %v617_v59 }
 0x12b   :  { %v1089_v36 = vmul.f32 %v1405_v34, %v785_v31  ;;  %v474_v37 = vmul.f32 %v458_v54, %v362_v24  ;;  %v658_v21 = vadd.f32 %v642_v18, %v617_v59  ;;  %v707_v20 = vadd.f32 %v2541_v13, %v619_v27  ;;  %v2601_v59 = vld [vmem:[#allocation8 + $0x40] sm:$0xff]  ;;  %v2605_v34 = vld [vmem:[#allocation10 + $0x58] sm:$0xff] }
 0x12c   :  { %v1104_v57 = vadd.f32 %v1088_v58, %v912_v17  ;;  %v489_v10 = vadd.f32 %v473_v15, %v2536_v30  ;;  %v770_v42 = vmul.f32 %v1607_v60, %v2517_v50  ;;  %v771_v2 = vmul.f32 %v1609_v25, %v2527_v8 }
 0x12d   :  { %v1105_v38 = vadd.f32 %v1089_v36, %v913_v51  ;;  %v490_v32 = vadd.f32 %v474_v37, %v186_v45  ;;  %v659_v31 = vadd.f32 %v643_v52, %v619_v27  ;;  %v802_v43 = vsub.f32 0.0, %v706_v56 }
 0x12e   :  { %v1611_v12 = vpop.eup %1610  ;;  %v1120_v18 = vadd.f32 %v2523_v33, %v1104_v57  ;;  %v995_v22 = vmul.f32 %v186_v45, %v186_v45  ;;  %v395_v13 = vadd.f32 %v379_v40, %v2549_v29  ;;  %v396_v41 = vadd.f32 %v380_v53, %v2559_v4 }
 0x12f   :  { %v1613_v26 = vpop.eup %1612  ;;  %v505_v30 = vmul.f32 %v2491_v14, %v489_v10  ;;  %v506_v50 = vmul.f32 %v2498_v9, %v490_v32  ;;  %v2585_v8 = vsel %vm754_vm14, %v1607_v60, %v770_v42  ;;  %v574_v47 = vmul.f32 1.442695, %v549_v35  ;;  %v2603_v60 = vld [vmem:[#allocation10 + $0x50] sm:$0xff] }
 0x130   :  { %v2587_v52 = vadd.f32 %v1120_v18, %v1105_v38  ;;  %v2591_v33 = vsel %vm755_vm15, %v1609_v25, %v771_v2  ;;  %v803_v23 = vsub.f32 0.0, %v707_v20  ;;  %v866_v1 = vsub.f32 0.0, %v658_v21  ;;  %v2613_v35 = vld [vmem:[#allocation11 + $0x50] sm:$0xff]  ;;  %v2629_v18 = vld [vmem:[#allocation11 + $0x58] sm:$0xff] }
 0x131   :  { %v1374_v16 = vadd.f32 1.609438, %v802_v43  ;;  %v867_v7 = vsub.f32 0.0, %v659_v31  ;;  %1616 = vlog2.f32 %v361_v44  ;;  %v978_v5 = vmul.f32 %v361_v44, %v361_v44 }
 0x132   :  { %v850_v14 = vsub.f32 1.0, %v2585_v8  ;;  %v1390_v9 = vadd.f32 0.22314355, %v866_v1  ;;  %1618 = vlog2.f32 %v362_v24  ;;  %v979_v63 = vmul.f32 %v362_v24, %v362_v24 }
 0x133   :  { %v1010_v17 = vadd.f32 %v2547_v39, %v978_v5  ;;  %v1482_v49 = vpack.c.bf16 %v506_v50, %v505_v30  ;;  %v315_v6 = vadd.f32 1.0, %v1611_v12  ;;  %v316_v46 = vadd.f32 1.0, %v1613_v26  ;;  %v188_v5 = vld [vmem:[#allocation8 + $0x48] sm:$0xff] }
 0x134   :  { %v2594_v3 = vpop.eup %1614  ;;  %v1375_v61 = vadd.f32 1.609438, %v803_v23  ;;  %v1011_v19 = vadd.f32 %v995_v22, %v979_v63  ;;  %1620 = vpow2.f32 %v574_v47  ;;  %v851_v28 = vsub.f32 1.0, %v2591_v33 }
 0x135   :  { %v1391_v51 = vadd.f32 0.22314355, %v867_v7  ;;  %1483 = vmatpush3.bf16.msra.mxu0 %v1482_v49  ;;  %1622 = vlog2.f32 %v315_v6  ;;  %v596_v55 = vadd.f32 1.0, %v2594_v3  ;;  %vm411_vm0 = vcmp.gt.f32.partialorder %v395_v13, 0.0  ;;  %v459_v6 = vld [vmem:[#allocation14 + $0x40] sm:$0xff] }
 0x136   :  { %1484 = vmatprep.subr.bf16.mxu0 %v2025_v0  ;;  %1624 = vlog2.f32 %v316_v46  ;;  %vm412_vm1 = vcmp.gt.f32.partialorder %v396_v41, 0.0  ;;  %v834_v39 = vmul.f32 %v1374_v16, %v2585_v8  ;;  %v898_v44 = vmul.f32 %v1390_v9, %v850_v14 }
 0x137   :  { %v1026_v54 = vmul.f32 0.5, %v1010_v17  ;;  %1626 = vlog2.f32 %v596_v55  ;;  %v235_v24 = vmax.f32 %v2506_v62, 0.0  ;;  %v236_v27 = vmax.f32 %v2512_v11, 0.0 }
 0x138   :  { %1628 = vrcp.f32 %v596_v55  ;;  %v835_v25 = vmul.f32 %v1375_v61, %v2591_v33  ;;  %v899_v58 = vmul.f32 %v1391_v51, %v851_v28  ;;  %v1027_v15 = vmul.f32 0.5, %v1011_v19  ;;  %v460_v51 = vld [vmem:[#allocation14 + $0x48] sm:$0xff] }
 0x139   :  { %v2611_v56 = vsel %vm411_vm0, 1.0, %v2885_v48  ;;  %v2617_v36 = vsel %vm412_vm1, 1.0, %v2885_v48  ;;  %v2621_v45 = vmul.f32 %v2601_v59, %v2601_v59  ;;  %v253_v62 = vand.u32 2147483647, %v2603_v60 }
 0x13a   :  { %v254_v11 = vand.u32 2147483647, %v2605_v34  ;;  %v914_v21 = vadd.f32 %v898_v44, %v834_v39  ;;  %v1042_v20 = vmul.f32 10.190264, %v1026_v54  ;;  %v644_v40 = vmax.f32 %v2549_v29, 0.0 }
 0x13b   :  { %v1617_v37 = vpop.eup %1616  ;;  %v676_v53 = vsub.f32 0.0, %v2549_v29  ;;  %v269_v42 = vsub.f32 0.0, %v253_v62  ;;  %v534_v38 = vand.u32 2147483647, %v2613_v35  ;;  %v915_v32 = vadd.f32 %v899_v58, %v835_v25 }
 0x13c   :  { %v1619_v57 = vpop.eup %1618  ;;  %v937_v10 = vmul.f32 0.6931472, %v1617_v37  ;;  %v270_v2 = vsub.f32 0.0, %v254_v11  ;;  %v1043_v43 = vmul.f32 10.190264, %v1027_v15  ;;  %v645_v12 = vmax.f32 %v2559_v4, 0.0 }
 0x13d   :  { %v939_v31 = vmul.f32 0.6931472, %v1619_v57  ;;  %v677_v41 = vsub.f32 0.0, %v2559_v4  ;;  %vm756_vm2 = vcmp.ge.f32.partialorder %v2549_v29, 0.0  ;;  %v295_v26 = vmul.f32 1.442695, %v269_v42 }
 0x13e   :  { %v2631_v22 = vpop.eup %1620  ;;  %v962_v13 = vsub.f32 -1.1607164, %v937_v10  ;;  %v692_v23 = vmax.f32 %v676_v53, 0.0  ;;  %v297_v1 = vmul.f32 1.442695, %v270_v2  ;;  %v550_v9 = vsub.f32 0.0, %v534_v38 }
 0x13f   :  { %v1623_v30 = vpop.eup %1622  ;;  %v963_v50 = vsub.f32 -1.1607164, %v939_v31  ;;  %v597_v47 = vadd.f32 1.0, %v2631_v22  ;;  %1630 = vpow2.f32 %v295_v26  ;;  %v535_v46 = vand.u32 2147483647, %v2629_v18 }
 0x140   :  { %v1625_v16 = vpop.eup %1624  ;;  %v1058_v7 = vadd.f32 %v1042_v20, %v962_v13  ;;  %v340_v14 = vmul.f32 0.6931472, %v1623_v30  ;;  %v997_v54 = vmul.f32 %v188_v5, %v188_v5  ;;  %v576_v62 = vmul.f32 1.442695, %v550_v9 }
 0x141   :  { %v1627_v63 = vpop.eup %1626  ;;  %v1059_v17 = vadd.f32 %v1043_v43, %v963_v50  ;;  %v342_v49 = vmul.f32 0.6931472, %v1625_v16  ;;  %1632 = vlog2.f32 %v597_v47  ;;  %v551_v10 = vsub.f32 0.0, %v535_v46 }
 0x142   :  { %v1629_v61 = vpop.eup %1628  ;;  %v1406_v19 = vadd.f32 -0.5, %v1058_v7  ;;  %v363_v28 = vadd.f32 %v340_v14, %v235_v24  ;;  %v621_v55 = vmul.f32 0.6931472, %v1627_v63  ;;  %1634 = vrcp.f32 %v597_v47 }
 0x143   :  { %v1407_v39 = vadd.f32 -0.5, %v1059_v17  ;;  %v364_v44 = vadd.f32 %v342_v49, %v236_v27  ;;  %1636 = vpow2.f32 %v297_v1  ;;  %v772_v20 = vmul.f32 %v1629_v61, %v2594_v3 }
 0x144   :  { %v1090_v25 = vmul.f32 %v1406_v19, %v2585_v8  ;;  %v475_v58 = vmul.f32 %v459_v6, %v363_v28  ;;  %v708_v15 = vadd.f32 %v692_v23, %v621_v55  ;;  %1638 = vlog2.f32 %v363_v28 }
 0x145   :  { %v1091_v11 = vmul.f32 %v1407_v39, %v2591_v33  ;;  %v476_v37 = vmul.f32 %v460_v51, %v364_v44  ;;  %v660_v57 = vadd.f32 %v644_v40, %v621_v55  ;;  %v693_v2 = vmax.f32 %v677_v41, 0.0  ;;  %v2662_v39 = vld [vmem:[#allocation10 + $0x68] sm:$0xff] }
 0x146   :  { %v1106_v53 = vadd.f32 %v1090_v25, %v914_v21  ;;  %v491_v24 = vadd.f32 %v475_v58, %v2601_v59  ;;  %1640 = vlog2.f32 %v364_v44  ;;  %v804_v31 = vsub.f32 0.0, %v708_v15 }
 0x147   :  { %v1107_v42 = vadd.f32 %v1091_v11, %v915_v32  ;;  %v492_v27 = vadd.f32 %v476_v37, %v188_v5  ;;  %v980_v43 = vmul.f32 %v363_v28, %v363_v28  ;;  %v2646_v3 = vsel %vm756_vm2, %v1629_v61, %v772_v20  ;;  %v381_v61 = vld [vmem:[#allocation13 + $0x50] sm:$0xff]  ;;  %v382_v37 = vld [vmem:[#allocation13 + $0x58] sm:$0xff] }
 0x148   :  { %v1122_v8 = vadd.f32 %v2587_v52, %v1106_v53  ;;  %v507_v38 = vmul.f32 %v2611_v56, %v491_v24  ;;  %v981_v21 = vmul.f32 %v364_v44, %v364_v44  ;;  %1642 = vpow2.f32 %v576_v62 }
 0x149   :  { %v508_v33 = vmul.f32 %v2617_v36, %v492_v27  ;;  %v1631_v59 = vpop.eup %1630  ;;  %v868_v32 = vsub.f32 0.0, %v660_v57  ;;  %v1012_v13 = vadd.f32 %v2621_v45, %v980_v43  ;;  %v578_v41 = vmul.f32 1.442695, %v551_v10 }
 0x14a   :  { %v2648_v40 = vadd.f32 %v1122_v8, %v1107_v42  ;;  %vm757_vm3 = vcmp.ge.f32.partialorder %v2559_v4, 0.0  ;;  %v1013_v56 = vadd.f32 %v997_v54, %v981_v21  ;;  %v317_v30 = vadd.f32 1.0, %v1631_v59 }
 0x14b   :  { %v1633_v52 = vpop.eup %1632  ;;  %v1485_v26 = vpack.c.bf16 %v508_v33, %v507_v38  ;;  %v1376_v29 = vadd.f32 1.609438, %v804_v31  ;;  %v852_v47 = vsub.f32 1.0, %v2646_v3  ;;  %1644 = vpow2.f32 %v578_v41 }
 0x14c   :  { %v1635_v36 = vpop.eup %1634  ;;  %v623_v50 = vmul.f32 0.6931472, %v1633_v52  ;;  %v1028_v16 = vmul.f32 0.5, %v1012_v13  ;;  %v1029_v7 = vmul.f32 0.5, %v1013_v56  ;;  %1646 = vlog2.f32 %v317_v30  ;;  %v461_v56 = vld [vmem:[#allocation14 + $0x50] sm:$0xff] }
 0x14d   :  { %v1637_v23 = vpop.eup %1636  ;;  %v773_v1 = vmul.f32 %v1635_v36, %v2631_v22  ;;  %1486 = vmatpush3.bf16.msra.mxu0 %v1485_v26  ;;  %v1392_v14 = vadd.f32 0.22314355, %v868_v32  ;;  %v836_v28 = vmul.f32 %v1376_v29, %v2646_v3  ;;  %v237_v62 = vmax.f32 %v2603_v60, 0.0  ;;  %v2677_v29 = vld [vmem:[#allocation11 + $0x60] sm:$0xff] }
 0x14e   :  { %v661_v45 = vadd.f32 %v645_v12, %v623_v50  ;;  %v709_v5 = vadd.f32 %v693_v2, %v623_v50  ;;  %1487 = vmatprep.subr.bf16.mxu0 %v2025_v0  ;;  %v318_v9 = vadd.f32 1.0, %v1637_v23  ;;  %v1639_v63 = vpop.eup %1638  ;;  %v1044_v51 = vmul.f32 10.190264, %v1028_v16  ;;  %v2660_v12 = vld [vmem:[#allocation10 + $0x60] sm:$0xff] }
 0x14f   :  { %v789_v17 = vsel %vm757_vm3, %v1635_v36, %v773_v1  ;;  %v941_v22 = vmul.f32 0.6931472, %v1639_v63  ;;  %v1045_v55 = vmul.f32 10.190264, %v1029_v7  ;;  %v900_v25 = vmul.f32 %v1392_v14, %v852_v47  ;;  %v189_v36 = vld [vmem:[#allocation8 + $0x50] sm:$0xff]  ;;  %v462_v14 = vld [vmem:[#allocation14 + $0x58] sm:$0xff] }
 0x150   :  { %v805_v49 = vsub.f32 0.0, %v709_v5  ;;  %v853_v6 = vsub.f32 1.0, %v789_v17  ;;  %v869_v46 = vsub.f32 0.0, %v661_v45  ;;  %v1641_v19 = vpop.eup %1640  ;;  %1648 = vlog2.f32 %v318_v9 }
 0x151   :  { %v943_v4 = vmul.f32 0.6931472, %v1641_v19  ;;  %v964_v15 = vsub.f32 -1.1607164, %v941_v22  ;;  %v238_v11 = vmax.f32 %v2605_v34, 0.0  ;;  %v397_v42 = vadd.f32 %v381_v61, %v2613_v35  ;;  %v2685_v22 = vld [vmem:[#allocation11 + $0x68] sm:$0xff] }
 0x152   :  { %v1377_v44 = vadd.f32 1.609438, %v805_v49  ;;  %v1393_v54 = vadd.f32 0.22314355, %v869_v46  ;;  %v2664_v58 = vpop.eup %1642  ;;  %v255_v27 = vand.u32 2147483647, %v2660_v12  ;;  %v916_v38 = vadd.f32 %v900_v25, %v836_v28 }
 0x153   :  { %v965_v24 = vsub.f32 -1.1607164, %v943_v4  ;;  %v598_v57 = vadd.f32 1.0, %v2664_v58  ;;  %v1060_v10 = vadd.f32 %v1044_v51, %v964_v15  ;;  %v256_v2 = vand.u32 2147483647, %v2662_v39  ;;  %v190_v19 = vld [vmem:[#allocation8 + $0x58] sm:$0xff] }
 0x154   :  { %v837_v20 = vmul.f32 %v1377_v44, %v789_v17  ;;  %v901_v53 = vmul.f32 %v1393_v54, %v853_v6  ;;  %v398_v60 = vadd.f32 %v382_v37, %v2629_v18  ;;  %v271_v59 = vsub.f32 0.0, %v255_v27 }
 0x155   :  { %v2672_v8 = vpop.eup %1644  ;;  %v1061_v31 = vadd.f32 %v1045_v55, %v965_v24  ;;  %1650 = vlog2.f32 %v598_v57  ;;  %v1408_v33 = vadd.f32 -0.5, %v1060_v10  ;;  %v272_v41 = vsub.f32 0.0, %v256_v2  ;;  %v383_v10 = vld [vmem:[#allocation13 + $0x60] sm:$0xff] }
 0x156   :  { %v1647_v34 = vpop.eup %1646  ;;  %v917_v43 = vadd.f32 %v901_v53, %v837_v20  ;;  %v599_v21 = vadd.f32 1.0, %v2672_v8  ;;  %1652 = vrcp.f32 %v598_v57  ;;  %vm413_vm4 = vcmp.gt.f32.partialorder %v397_v42, 0.0 }
 0x157   :  { %v1409_v32 = vadd.f32 -0.5, %v1061_v31  ;;  %v344_v13 = vmul.f32 0.6931472, %v1647_v34  ;;  %v1092_v52 = vmul.f32 %v1408_v33, %v2646_v3  ;;  %v299_v26 = vmul.f32 1.442695, %v271_v59  ;;  %v384_v59 = vld [vmem:[#allocation13 + $0x68] sm:$0xff] }
 0x158   :  { %1654 = vlog2.f32 %v599_v21  ;;  %v301_v47 = vmul.f32 1.442695, %v272_v41  ;;  %vm414_vm5 = vcmp.gt.f32.partialorder %v398_v60, 0.0  ;;  %v678_v16 = vsub.f32 0.0, %v2613_v35 }
 0x159   :  { %v1093_v30 = vmul.f32 %v1409_v32, %v789_v17  ;;  %v365_v50 = vadd.f32 %v344_v13, %v237_v62  ;;  %1656 = vrcp.f32 %v599_v21  ;;  %v1108_v1 = vadd.f32 %v1092_v52, %v916_v38 }
 0x15a   :  { %v1649_v23 = vpop.eup %1648  ;;  %1658 = vpow2.f32 %v299_v26  ;;  %v998_v9 = vmul.f32 %v189_v36, %v189_v36  ;;  %v536_v63 = vand.u32 2147483647, %v2677_v29  ;;  %v1362_v49 = vsel %vm413_vm4, 1.0, %v2885_v48 }
 0x15b   :  { %v1109_v7 = vadd.f32 %v1093_v30, %v917_v43  ;;  %v346_v45 = vmul.f32 0.6931472, %v1649_v23  ;;  %v477_v3 = vmul.f32 %v461_v56, %v365_v50  ;;  %1660 = vlog2.f32 %v365_v50 }
 0x15c   :  { %v1124_v5 = vadd.f32 %v2648_v40, %v1108_v1  ;;  %1662 = vpow2.f32 %v301_v47  ;;  %v679_v46 = vsub.f32 0.0, %v2629_v18  ;;  %v694_v28 = vmax.f32 %v678_v16, 0.0 }
 0x15d   :  { %v366_v17 = vadd.f32 %v346_v45, %v238_v11  ;;  %v493_v6 = vadd.f32 %v477_v3, %v189_v36  ;;  %v982_v51 = vmul.f32 %v365_v50, %v365_v50  ;;  %v552_v40 = vsub.f32 0.0, %v536_v63 }
 0x15e   :  { %v2687_v61 = vadd.f32 %v1124_v5, %v1109_v7  ;;  %v1363_v44 = vsel %vm414_vm5, 1.0, %v2885_v48  ;;  %v646_v25 = vmax.f32 %v2613_v35, 0.0  ;;  %v647_v4 = vmax.f32 %v2629_v18, 0.0 }
 0x15f   :  { %v1651_v55 = vpop.eup %1650  ;;  %v478_v54 = vmul.f32 %v462_v14, %v366_v17  ;;  %1664 = vlog2.f32 %v366_v17  ;;  %v537_v62 = vand.u32 2147483647, %v2685_v22  ;;  %v580_v11 = vmul.f32 1.442695, %v552_v40 }
 0x160   :  { %v625_v15 = vmul.f32 0.6931472, %v1651_v55  ;;  %v1653_v37 = vpop.eup %1652  ;;  %v509_v53 = vmul.f32 %v1362_v49, %v493_v6  ;;  %v695_v24 = vmax.f32 %v679_v46, 0.0  ;;  %v999_v57 = vmul.f32 %v190_v19, %v190_v19 }
 0x161   :  { %v494_v20 = vadd.f32 %v478_v54, %v190_v19  ;;  %v983_v2 = vmul.f32 %v366_v17, %v366_v17  ;;  %v1014_v38 = vadd.f32 %v998_v9, %v982_v51  ;;  %1666 = vpow2.f32 %v580_v11  ;;  %v2708_v19 = vld [vmem:[#allocation10 + $0x70] sm:$0xff] }
 0x162   :  { %v1655_v42 = vpop.eup %1654  ;;  %v710_v27 = vadd.f32 %v694_v28, %v625_v15  ;;  %v662_v43 = vadd.f32 %v646_v25, %v625_v15  ;;  %vm758_vm6 = vcmp.ge.f32.partialorder %v2613_v35, 0.0  ;;  %v774_v21 = vmul.f32 %v1653_v37, %v2664_v58  ;;  %v2716_v15 = vld [vmem:[#allocation10 + $0x78] sm:$0xff] }
 0x163   :  { %v1657_v31 = vpop.eup %1656  ;;  %v510_v60 = vmul.f32 %v1363_v44, %v494_v20  ;;  %v627_v34 = vmul.f32 0.6931472, %v1655_v42  ;;  %v399_v32 = vadd.f32 %v383_v10, %v2677_v29  ;;  %v553_v13 = vsub.f32 0.0, %v537_v62  ;;  %v2728_v42 = vld [vmem:[#allocation11 + $0x78] sm:$0xff] }
 0x164   :  { %v1659_v33 = vpop.eup %1658  ;;  %v775_v26 = vmul.f32 %v1657_v31, %v2672_v8  ;;  %vm759_vm7 = vcmp.ge.f32.partialorder %v2629_v18, 0.0  ;;  %v806_v50 = vsub.f32 0.0, %v710_v27  ;;  %v1015_v47 = vadd.f32 %v999_v57, %v983_v2 }
 0x165   :  { %v1661_v41 = vpop.eup %1660  ;;  %v663_v52 = vadd.f32 %v647_v4, %v627_v34  ;;  %v711_v56 = vadd.f32 %v695_v24, %v627_v34  ;;  %v1488_v30 = vpack.c.bf16 %v510_v60, %v509_v53  ;;  %v1030_v23 = vmul.f32 0.5, %v1014_v38  ;;  %v2724_v53 = vld [vmem:[#allocation11 + $0x70] sm:$0xff] }
 0x166   :  { %v1663_v36 = vpop.eup %1662  ;;  %v870_v1 = vsub.f32 0.0, %v662_v43  ;;  %v945_v16 = vmul.f32 0.6931472, %v1661_v41  ;;  %v319_v58 = vadd.f32 1.0, %v1659_v33  ;;  %v400_v7 = vadd.f32 %v384_v59, %v2685_v22 }
 0x167   :  { %1489 = vmatpush3.bf16.msra.mxu0 %v1488_v30  ;;  %v2702_v45 = vsel %vm758_vm6, %v1653_v37, %v774_v21  ;;  %v807_v3 = vsub.f32 0.0, %v711_v56  ;;  %v871_v5 = vsub.f32 0.0, %v663_v52  ;;  %v320_v8 = vadd.f32 1.0, %v1663_v36  ;;  %v191_v30 = vld [vmem:[#allocation8 + $0x60] sm:$0xff] }
 0x168   :  { %1490 = vmatprep.subr.bf16.mxu0 %v2025_v0  ;;  %v2705_v14 = vsel %vm759_vm7, %v1657_v31, %v775_v26  ;;  %1668 = vlog2.f32 %v319_v58  ;;  %vm415_vm8 = vcmp.gt.f32.partialorder %v399_v32, 0.0  ;;  %v582_v18 = vmul.f32 1.442695, %v553_v13 }
 0x169   :  { %v1665_v9 = vpop.eup %1664  ;;  %v1378_v63 = vadd.f32 1.609438, %v806_v50  ;;  %v1031_v17 = vmul.f32 0.5, %v1015_v47  ;;  %v1046_v49 = vmul.f32 10.190264, %v1030_v23  ;;  %1670 = vlog2.f32 %v320_v8  ;;  %v464_v8 = vld [vmem:[#allocation14 + $0x68] sm:$0xff] }
 0x16a   :  { %v854_v6 = vsub.f32 1.0, %v2702_v45  ;;  %v1394_v35 = vadd.f32 0.22314355, %v870_v1  ;;  %v966_v46 = vsub.f32 -1.1607164, %v945_v16  ;;  %1672 = vpow2.f32 %v582_v18  ;;  %v192_v16 = vld [vmem:[#allocation8 + $0x68] sm:$0xff] }
 0x16b   :  { %v2710_v28 = vpop.eup %1666  ;;  %v1379_v51 = vadd.f32 1.609438, %v807_v3  ;;  %v855_v40 = vsub.f32 1.0, %v2705_v14  ;;  %v1395_v55 = vadd.f32 0.22314355, %v871_v5  ;;  %v239_v44 = vmax.f32 %v2660_v12, 0.0 }
 0x16c   :  { %v947_v54 = vmul.f32 0.6931472, %v1665_v9  ;;  %v240_v25 = vmax.f32 %v2662_v39, 0.0  ;;  %vm416_vm9 = vcmp.gt.f32.partialorder %v400_v7, 0.0  ;;  %v600_v4 = vadd.f32 1.0, %v2710_v28  ;;  %v463_v7 = vld [vmem:[#allocation14 + $0x60] sm:$0xff] }
 0x16d   :  { %v838_v62 = vmul.f32 %v1378_v63, %v2702_v45  ;;  %v1047_v11 = vmul.f32 10.190264, %v1031_v17  ;;  %v2721_v37 = vsel %vm415_vm8, 1.0, %v2885_v48  ;;  %v680_v20 = vsub.f32 0.0, %v2677_v29 }
 0x16e   :  { %v902_v12 = vmul.f32 %v1394_v35, %v854_v6  ;;  %v1062_v24 = vadd.f32 %v1046_v49, %v966_v46  ;;  %1674 = vlog2.f32 %v600_v4  ;;  %v257_v39 = vand.u32 2147483647, %v2708_v19  ;;  %v385_v6 = vld [vmem:[#allocation13 + $0x70] sm:$0xff] }
 0x16f   :  { %v839_v57 = vmul.f32 %v1379_v51, %v2705_v14  ;;  %v903_v10 = vmul.f32 %v1395_v55, %v855_v40  ;;  %1676 = vrcp.f32 %v600_v4  ;;  %v258_v27 = vand.u32 2147483647, %v2716_v15  ;;  %v386_v55 = vld [vmem:[#allocation13 + $0x78] sm:$0xff] }
 0x170   :  { %v967_v2 = vsub.f32 -1.1607164, %v947_v54  ;;  %v1365_v38 = vsel %vm416_vm9, 1.0, %v2885_v48  ;;  %v273_v31 = vsub.f32 0.0, %v257_v39  ;;  %v538_v60 = vand.u32 2147483647, %v2724_v53 }
 0x171   :  { %v648_v34 = vmax.f32 %v2677_v29, 0.0  ;;  %v649_v43 = vmax.f32 %v2685_v22, 0.0  ;;  %v681_v33 = vsub.f32 0.0, %v2685_v22  ;;  %v274_v21 = vsub.f32 0.0, %v258_v27 }
 0x172   :  { %v1669_v59 = vpop.eup %1668  ;;  %v918_v32 = vadd.f32 %v902_v12, %v838_v62  ;;  %v1410_v13 = vadd.f32 -0.5, %v1062_v24  ;;  %v303_v41 = vmul.f32 1.442695, %v273_v31  ;;  %v539_v52 = vand.u32 2147483647, %v2728_v42 }
 0x173   :  { %v1671_v56 = vpop.eup %1670  ;;  %v2738_v26 = vadd.f32 %v903_v10, %v839_v57  ;;  %v348_v36 = vmul.f32 0.6931472, %v1669_v59  ;;  %v696_v50 = vmax.f32 %v680_v20, 0.0  ;;  %v305_v47 = vmul.f32 1.442695, %v274_v21 }
 0x174   :  { %v2740_v23 = vpop.eup %1672  ;;  %v1063_v1 = vadd.f32 %v1047_v11, %v967_v2  ;;  %v350_v58 = vmul.f32 0.6931472, %v1671_v56  ;;  %1678 = vpow2.f32 %v303_v41  ;;  %v554_v3 = vsub.f32 0.0, %v538_v60 }
 0x175   :  { %v367_v5 = vadd.f32 %v348_v36, %v239_v44  ;;  %v601_v18 = vadd.f32 1.0, %v2740_v23  ;;  %v2743_v9 = vmax.f32 %v681_v33, 0.0  ;;  %vm760_vm10 = vcmp.ge.f32.partialorder %v2677_v29, 0.0 }
 0x176   :  { %1680 = vpow2.f32 %v305_v47  ;;  %v1094_v63 = vmul.f32 %v1410_v13, %v2702_v45  ;;  %v368_v17 = vadd.f32 %v350_v58, %v240_v25  ;;  %v1000_v49 = vmul.f32 %v191_v30, %v191_v30 }
 0x177   :  { %v555_v35 = vsub.f32 0.0, %v539_v52  ;;  %v479_v46 = vmul.f32 %v463_v7, %v367_v5  ;;  %1682 = vlog2.f32 %v601_v18  ;;  %v984_v51 = vmul.f32 %v367_v5, %v367_v5  ;;  %v2774_v7 = vld [vmem:[#allocation19] sm:$0x1] }
 0x178   :  { %v1001_v40 = vmul.f32 %v192_v16, %v192_v16  ;;  %v1675_v44 = vpop.eup %1674  ;;  %v1411_v54 = vadd.f32 -0.5, %v1063_v1  ;;  %v480_v4 = vmul.f32 %v464_v8, %v368_v17  ;;  %1684 = vrcp.f32 %v601_v18 }
 0x179   :  { %v584_v62 = vmul.f32 1.442695, %v554_v3  ;;  %v1677_v11 = vpop.eup %1676  ;;  %v495_v20 = vadd.f32 %v479_v46, %v191_v30  ;;  %v629_v12 = vmul.f32 0.6931472, %v1675_v44  ;;  %1686 = vlog2.f32 %v367_v5 }
 0x17a   :  { %v401_v45 = vadd.f32 %v385_v6, %v2724_v53  ;;  %v496_v25 = vadd.f32 %v480_v4, %v192_v16  ;;  %1688 = vlog2.f32 %v368_v17  ;;  %v402_v24 = vadd.f32 %v386_v55, %v2728_v42 }
 0x17b   :  { %v586_v39 = vmul.f32 1.442695, %v555_v35  ;;  %v1110_v57 = vadd.f32 %v1094_v63, %v918_v32  ;;  %v511_v10 = vmul.f32 %v2721_v37, %v495_v20  ;;  %v985_v27 = vmul.f32 %v368_v17, %v368_v17 }
 0x17c   :  { %v1016_v2 = vadd.f32 %v1000_v49, %v984_v51  ;;  %v1095_v31 = vmul.f32 %v1411_v54, %v2705_v14  ;;  %v512_v60 = vmul.f32 %v1365_v38, %v496_v25  ;;  %v776_v33 = vmul.f32 %v1677_v11, %v2710_v28 }
 0x17d   :  { %1690 = vpow2.f32 %v584_v62  ;;  %v712_v21 = vadd.f32 %v696_v50, %v629_v12  ;;  %vm761_vm11 = vcmp.ge.f32.partialorder %v2685_v22, 0.0  ;;  %v241_v59 = vmax.f32 %v2708_v19, 0.0 }
 0x17e   :  { %vm417_vm12 = vcmp.gt.f32.partialorder %v401_v45, 0.0  ;;  %v1679_v13 = vpop.eup %1678  ;;  %v664_v32 = vadd.f32 %v648_v34, %v629_v12  ;;  %v1491_v41 = vpack.c.bf16 %v512_v60, %v511_v10  ;;  %vm418_vm13 = vcmp.gt.f32.partialorder %v402_v24, 0.0  ;;  %v193_v60 = vld [vmem:[#allocation8 + $0x70] sm:$0xff] }
 0x17f   :  { %1692 = vpow2.f32 %v586_v39  ;;  %v1017_v52 = vadd.f32 %v1001_v40, %v985_v27  ;;  %v1032_v14 = vmul.f32 0.5, %v1016_v2  ;;  %v242_v38 = vmax.f32 %v2716_v15, 0.0 }
 0x180   :  { %v1681_v37 = vpop.eup %1680  ;;  %v321_v28 = vadd.f32 1.0, %v1679_v13  ;;  %v1111_v56 = vadd.f32 %v1095_v31, %v2738_v26  ;;  %v1126_v30 = vadd.f32 %v2687_v61, %v1110_v57  ;;  %v2761_v36 = vsel %vm760_vm10, %v1677_v11, %v776_v33  ;;  %1492 = vmatpush3.bf16.msra.mxu0 %v1491_v41  ;;  %v2772_v61 = vld [vmem:[#allocation17] sm:$0x1]  ;;  %v194_v33 = vld [vmem:[#allocation8 + $0x78] sm:$0xff] }
 0x181   :  { %v322_v50 = vadd.f32 1.0, %v1681_v37  ;;  %v1683_v34 = vpop.eup %1682  ;;  %v808_v47 = vsub.f32 0.0, %v712_v21  ;;  %1493 = vmatprep.subr.bf16.mxu0 %v2025_v0  ;;  %v2766_v1 = vsel %vm417_vm12, 1.0, %v2885_v48  ;;  %v2770_v26 = vsel %vm418_vm13, 1.0, %v2885_v48 }
 0x182   :  { %1694 = vlog2.f32 %v321_v28  ;;  %v1685_v29 = vpop.eup %1684  ;;  %v631_v16 = vmul.f32 0.6931472, %v1683_v34  ;;  %v872_v58 = vsub.f32 0.0, %v664_v32  ;;  %v856_v5 = vsub.f32 1.0, %v2761_v36 }
 0x183   :  { %1696 = vlog2.f32 %v322_v50  ;;  %v1687_v3 = vpop.eup %1686  ;;  %v777_v0 = vmul.f32 %v1685_v29, %v2740_v23  ;;  %v1033_v8 = vmul.f32 0.5, %v1017_v52  ;;  %v1048_v18 = vmul.f32 10.190264, %v1032_v14  ;;  %v465_v50 = vld [vmem:[#allocation14 + $0x70] sm:$0xff] }
 0x184   :  { %vm2027_vm14 = vmmov 0   ;;  %v1689_v63 = vpop.eup %1688  ;;  %v665_v17 = vadd.f32 %v649_v43, %v631_v16  ;;  %v713_v49 = vadd.f32 %v2743_v9, %v631_v16  ;;  %v949_v6 = vmul.f32 0.6931472, %v1687_v3 }
 0x185   :  { %1469 = vmatprep.mubr.msk.f32.mxu0 %vm2027_vm14, %v2885_v48  ;;  %v1229_v35 = vand.u32 2147483647, %v2772_v61  ;;  %v2783_v46 = vadd.f32 %v1126_v30, %v1111_v56  ;;  %v1380_v51 = vadd.f32 1.609438, %v808_v47  ;;  %v951_v23 = vmul.f32 0.6931472, %v1689_v63 }
 0x186   :  { %v1255_v40 = vand.u32 2147483647, %v2774_v7  ;;  %v2790_v44 = vsel %vm761_vm11, %v1685_v29, %v777_v0  ;;  %v809_v54 = vsub.f32 0.0, %v713_v49  ;;  %v1396_v4 = vadd.f32 0.22314355, %v872_v58  ;;  %v466_v29 = vld [vmem:[#allocation14 + $0x78] sm:$0xff] }
 0x187   :  { %v2786_v55 = vpop.eup %1690  ;;  %v968_v43 = vsub.f32 -1.1607164, %v949_v6  ;;  %v873_v62 = vsub.f32 0.0, %v665_v17  ;;  %v1230_v11 = vsub.f32 0.0, %v1229_v35  ;;  %v969_v45 = vsub.f32 -1.1607164, %v951_v23 }
 0x188   :  { %v602_v9 = vadd.f32 1.0, %v2786_v55  ;;  %v1256_v20 = vsub.f32 0.0, %v1255_v40  ;;  %v1049_v25 = vmul.f32 10.190264, %v1033_v8  ;;  %v650_v24 = vmax.f32 %v2724_v53, 0.0 }
 0x189   :  { %v2793_v12 = vpop.eup %1692  ;;  %v651_v39 = vmax.f32 %v2728_v42, 0.0  ;;  %v1064_v57 = vadd.f32 %v1048_v18, %v968_v43  ;;  %v1231_v10 = vmul.f32 1.442695, %v1230_v11  ;;  %v840_v27 = vmul.f32 %v1380_v51, %v2761_v36 }
 0x18a   :  { %v603_v22 = vadd.f32 1.0, %v2793_v12  ;;  %1698 = vlog2.f32 %v602_v9  ;;  %v857_v2 = vsub.f32 1.0, %v2790_v44  ;;  %v904_v31 = vmul.f32 %v1396_v4, %v856_v5 }
 0x18b   :  { %1700 = vrcp.f32 %v602_v9  ;;  %v1381_v13 = vadd.f32 1.609438, %v809_v54  ;;  %v1397_v32 = vadd.f32 0.22314355, %v873_v62  ;;  %v1257_v41 = vmul.f32 1.442695, %v1256_v20 }
 0x18c   :  { %v1695_v21 = vpop.eup %1694  ;;  %1702 = vlog2.f32 %v603_v22  ;;  %v1065_v52 = vadd.f32 %v1049_v25, %v969_v45  ;;  %v682_v28 = vsub.f32 0.0, %v2724_v53  ;;  %v1412_v56 = vadd.f32 -0.5, %v1064_v57 }
 0x18d   :  { %v1697_v37 = vpop.eup %1696  ;;  %v352_v14 = vmul.f32 0.6931472, %v1695_v21  ;;  %1704 = vrcp.f32 %v603_v22  ;;  %v683_v34 = vsub.f32 0.0, %v2728_v42  ;;  %v1002_v16 = vmul.f32 %v193_v60, %v193_v60 }
 0x18e   :  { %v354_v30 = vmul.f32 0.6931472, %v1697_v37  ;;  %1706 = vpow2.f32 %v1231_v10  ;;  %v1003_v58 = vmul.f32 %v194_v33, %v194_v33  ;;  %v841_v3 = vmul.f32 %v1381_v13, %v2790_v44  ;;  %v1144_v37 = vld [vmem:[#allocation4] sm:$0xff] }
 0x18f   :  { %v369_v47 = vadd.f32 %v352_v14, %v241_v59  ;;  %1708 = vpow2.f32 %v1257_v41  ;;  %v905_v0 = vmul.f32 %v1397_v32, %v857_v2  ;;  %v920_v5 = vadd.f32 %v904_v31, %v840_v27 }
 0x190   :  { %v370_v8 = vadd.f32 %v354_v30, %v242_v38  ;;  %v1413_v18 = vadd.f32 -0.5, %v1065_v52  ;;  %v1096_v49 = vmul.f32 %v1412_v56, %v2761_v36  ;;  %v698_v35 = vmax.f32 %v682_v28, 0.0 }
 0x191   :  { %v481_v63 = vmul.f32 %v465_v50, %v369_v47  ;;  %1710 = vlog2.f32 %v369_v47  ;;  %v986_v17 = vmul.f32 %v369_v47, %v369_v47  ;;  %v699_v51 = vmax.f32 %v683_v34, 0.0 }
 0x192   :  { %v482_v6 = vmul.f32 %v466_v29, %v370_v8  ;;  %1712 = vlog2.f32 %v370_v8  ;;  %v987_v19 = vmul.f32 %v370_v8, %v370_v8  ;;  %vm762_vm15 = vcmp.ge.f32.partialorder %v2724_v53, 0.0 }
 0x193   :  { %v497_v59 = vadd.f32 %v481_v63, %v193_v60  ;;  %v1018_v23 = vadd.f32 %v1002_v16, %v986_v17  ;;  %vm763_vm0 = vcmp.ge.f32.partialorder %v2728_v42, 0.0  ;;  %v921_v4 = vadd.f32 %v905_v0, %v841_v3 }
 0x194   :  { %v1699_v40 = vpop.eup %1698  ;;  %v498_v54 = vadd.f32 %v482_v6, %v194_v33  ;;  %v1019_v15 = vadd.f32 %v1003_v58, %v987_v19  ;;  %v1097_v11 = vmul.f32 %v1413_v18, %v2790_v44  ;;  %v1112_v20 = vadd.f32 %v1096_v49, %v920_v5 }
 0x195   :  { %v1701_v38 = vpop.eup %1700  ;;  %v513_v43 = vmul.f32 %v2766_v1, %v497_v59  ;;  %v633_v62 = vmul.f32 0.6931472, %v1699_v40  ;;  %v1034_v36 = vmul.f32 0.5, %v1018_v23  ;;  %vm1269_vm1 = vcmp.ge.f32.partialorder %v2774_v7, 0.0 }
 0x196   :  { %v1703_v9 = vpop.eup %1702  ;;  %v514_v45 = vmul.f32 %v2770_v26, %v498_v54  ;;  %v778_v25 = vmul.f32 %v1701_v38, %v2786_v55  ;;  %v1035_v2 = vmul.f32 0.5, %v1019_v15  ;;  %v1113_v63 = vadd.f32 %v1097_v11, %v921_v4  ;;  %v2829_v4 = vld [vmem:[#allocation16] sm:$0x1] }
 0x197   :  { %v1705_v57 = vpop.eup %1704  ;;  %v635_v22 = vmul.f32 0.6931472, %v1703_v9  ;;  %v666_v10 = vadd.f32 %v650_v24, %v633_v62  ;;  %v714_v27 = vadd.f32 %v698_v35, %v633_v62  ;;  %v1050_v33 = vmul.f32 10.190264, %v1034_v36 }
 0x198   :  { %v1707_v31 = vpop.eup %1706  ;;  %v779_v1 = vmul.f32 %v1705_v57, %v2793_v12  ;;  %v794_v60 = vsel %vm762_vm15, %v1701_v38, %v778_v25  ;;  %v1494_v44 = vpack.c.bf16 %v514_v45, %v513_v43  ;;  %v1051_v47 = vmul.f32 10.190264, %v1035_v2 }
 0x199   :  { %v2819_v21 = vpop.eup %1708  ;;  %v667_v26 = vadd.f32 %v651_v39, %v635_v22  ;;  %v715_v55 = vadd.f32 %v699_v51, %v635_v22  ;;  %v810_v13 = vsub.f32 0.0, %v714_v27  ;;  %v858_v32 = vsub.f32 1.0, %v794_v60 }
 0x19a   :  { %v795_v24 = vsel %vm763_vm0, %v1705_v57, %v779_v1  ;;  %v874_v41 = vsub.f32 0.0, %v666_v10  ;;  %1495 = vmatpush3.bf16.msra.mxu0 %v1494_v44  ;;  %v1233_v12 = vadd.f32 1.0, %v1707_v31  ;;  %v1259_v53 = vadd.f32 1.0, %v2819_v21 }
 0x19b   :  { %v1711_v52 = vpop.eup %1710  ;;  %v811_v14 = vsub.f32 0.0, %v715_v55  ;;  %v1382_v28 = vadd.f32 1.609438, %v810_v13  ;;  %v859_v56 = vsub.f32 1.0, %v795_v24  ;;  %v875_v30 = vsub.f32 0.0, %v667_v26 }
 0x19c   :  { %v1713_v50 = vpop.eup %1712  ;;  %v1398_v34 = vadd.f32 0.22314355, %v874_v41  ;;  %v953_v39 = vmul.f32 0.6931472, %v1711_v52  ;;  %1714 = vlog2.f32 %v1233_v12  ;;  %v1128_v17 = vadd.f32 %v2783_v46, %v1112_v20 }
 0x19d   :  { %v1383_v29 = vadd.f32 1.609438, %v811_v14  ;;  %v1399_v16 = vadd.f32 0.22314355, %v875_v30  ;;  %v955_v42 = vmul.f32 0.6931472, %v1713_v50  ;;  %1470 = vmatmul.mubr.f32.vlgmr.msra.gmra.mrb[0].mxu0 %v1144_v37  ;;  %v842_v58 = vmul.f32 %v1382_v28, %v794_v60 }
 0x19e   :  { %v906_v3 = vmul.f32 %v1398_v34, %v858_v32  ;;  %v970_v0 = vsub.f32 -1.1607164, %v953_v39  ;;  %1716 = vlog2.f32 %v1259_v53  ;;  %v1129_v23 = vadd.f32 %v1128_v17, %v1113_v63  ;;  %v1116_v28 = vld [vmem:[#allocation3] sm:$0x1] }
 0x19f   :  { %v843_v5 = vmul.f32 %v1383_v29, %v795_v24  ;;  %v907_v8 = vmul.f32 %v1399_v16, %v859_v56  ;;  %v971_v18 = vsub.f32 -1.1607164, %v955_v42  ;;  %1718 = vrcp.f32 %v1259_v53 }
 0x1a0   :  { %v1066_v49 = vadd.f32 %v1050_v33, %v970_v0  ;;  %v922_v19 = vadd.f32 %v906_v3, %v842_v58  ;;  %v1264_v54 = vsub.f32 0.0, %v2774_v7  ;;  %v1228_v38 = vmax.f32 %v2772_v61, 0.0 }
 0x1a1   :  { %v1067_v6 = vadd.f32 %v1051_v47, %v971_v18  ;;  %v923_v35 = vadd.f32 %v907_v8, %v843_v5  ;;  %v1262_v20 = vmax.f32 %v2774_v7, 0.0  ;;  %v1284_v27 = vmul.f32 %v2829_v4, %v2829_v4 }
 0x1a2   :  { %v1414_v59 = vadd.f32 -0.5, %v1066_v49  ;;  %v1265_v45 = vmax.f32 %v1264_v54, 0.0  ;;  %vm1293_vm2 = vcmask 1040384  }
 0x1a3   :  { %v1415_v51 = vadd.f32 -0.5, %v1067_v6 }
 0x1a4   :  { %v1098_v40 = vmul.f32 %v1414_v59, %v794_v60 }
 0x1a5   :  { %v1099_v15 = vmul.f32 %v1415_v51, %v795_v24 }
 0x1a6   :  { %v1715_v43 = vpop.eup %1714  ;;  %v1114_v62 = vadd.f32 %v1098_v40, %v922_v19 }
 0x1a7   :  { %v1115_v36 = vadd.f32 %v1099_v15, %v923_v35  ;;  %v1235_v46 = vmul.f32 0.6931472, %v1715_v43  ;;  %v1237_v15 = vld [vmem:[#allocation20] sm:$0x1]  ;;  %v1242_v43 = vld [vmem:[#allocation22] sm:$0x1] }
 0x1a8   :  { %v1717_v9 = vpop.eup %1716  ;;  %v1130_v11 = vadd.f32 %v1129_v23, %v1114_v62 }
 0x1a9   :  { %v2832_v25 = vadd.f32 %v1235_v46, %v1228_v38  ;;  %v1261_v57 = vmul.f32 0.6931472, %v1717_v9  ;;  %v1719_v22 = vpop.eup %1718  ;;  %v1248_v9 = vlaneseq }
 0x1aa   :  { %v1131_v10 = vadd.f32 %v1130_v11, %v1115_v36  ;;  %v1270_v60 = vmul.f32 %v1719_v22, %v2819_v21  ;;  %v1238_v36 = vadd.f32 %v1237_v15, %v2774_v7 }
 0x1ab   :  { %1720 = vlog2.f32 %v2832_v25  ;;  %v1283_v61 = vmul.f32 %v2832_v25, %v2832_v25  ;;  %v1263_v31 = vadd.f32 %v1262_v20, %v1261_v57  ;;  %v1266_v1 = vadd.f32 %v1265_v45, %v1261_v57 }
 0x1ac   :  { %v1132_v2 = vrot.slane %v1131_v10, 4  ;;  %v1271_v32 = vsel %vm1269_vm1, %v1719_v22, %v1270_v60  ;;  %v1243_v46 = vmul.f32 %v1242_v43, %v2832_v25  ;;  %vm1239_vm3 = vcmp.gt.f32.partialorder %v1238_v36, 0.0 }
 0x1ad   :  { %v1285_v44 = vadd.f32 %v1284_v27, %v1283_v61  ;;  %v1272_v55 = vsub.f32 0.0, %v1266_v1  ;;  %v1276_v13 = vsub.f32 0.0, %v1263_v31  ;;  %v1275_v53 = vsub.f32 1.0, %v1271_v32 }
 0x1ae   :  { %v1133_v33 = vadd.f32 %v1132_v2, %v1131_v10  ;;  %v1244_v11 = vadd.f32 %v1243_v46, %v2829_v4  ;;  %v1249_v20 = vshrl.u32 %v1248_v9, 7  ;;  %v1416_v45 = vsel %vm1239_vm3, 1.0, %v2885_v48 }
 0x1af   :  { %v1286_v41 = vmul.f32 0.5, %v1285_v44  ;;  %v1417_v12 = vadd.f32 1.609438, %v1272_v55  ;;  %v1418_v52 = vadd.f32 0.22314355, %v1276_v13 }
 0x1b0   :  { %v1134_v26 = vrot.slane %v1133_v33, 2  ;;  %v1245_v57 = vmul.f32 %v1416_v45, %v1244_v11  ;;  %v1250_v22 = vsub.s32 0, %v1249_v20 }
 0x1b1   :  { %v1287_v50 = vmul.f32 10.190264, %v1286_v41  ;;  %v1274_v34 = vmul.f32 %v1417_v12, %v1271_v32  ;;  %v1278_v39 = vmul.f32 %v1418_v52, %v1275_v53 }
 0x1b2   :  { %v1135_v24 = vadd.f32 %v1134_v26, %v1133_v33  ;;  %v1251_v10 = vrot.slane %v1245_v57, %v1250_v22 }
 0x1b3   :  { %v1279_v16 = vadd.f32 %v1278_v39, %v1274_v34 }
 0x1b4   :  { %v1136_v37 = vrot.slane %v1135_v24, 1 }
 0x1b5   :  { %v1721_v14 = vpop.eup %1720 }
 0x1b6   :  { %v1137_v56 = vadd.f32 %v1136_v37, %v1135_v24  ;;  %v1281_v30 = vmul.f32 0.6931472, %v1721_v14 }
 0x1b8   :  { %v1138_v21 = vadd.f32 %v1137_v56, %v1116_v28  ;;  %v1282_v47 = vsub.f32 -1.1607164, %v1281_v30 }
 0x1ba   :  { %1139 = vst [vmem:[#allocation3] sm:$0x1] %v1138_v21  ;;  %v1288_v29 = vadd.f32 %v1287_v50, %v1282_v47 }
 0x1bc   :  { %v1419_v42 = vadd.f32 -0.5, %v1288_v29 }
 0x1be   :  { %v1290_v58 = vmul.f32 %v1419_v42, %v1271_v32 }
 0x1c0   :  { %v1291_v3 = vadd.f32 %v1290_v58, %v1279_v16 }
 0x1c1   :  { %v1292_v0 = vld [vmem:[#allocation3] sm:$0x1] }
 0x1c2   :  { %v1294_v5 = vsel %vm1293_vm2, %v1292_v0, 0.0  ;;  %v1304_v8 = vsel %vm1293_vm2, %v1291_v3, 0.0 }
 0x1c3   :  { %1295 = vadd.xlane.f32.xlu0 %v1294_v5 }
 0x1c7   :  { %1305 = vadd.xlane.f32.xlu0 %v1304_v8 }
 0x250   :  { %v1296_v18 = vpop.xlane.xlu0 %1295 }
 0x251   :  { %v1297_v63 = vrot.slane %v1296_v18, 4 }
 0x253   :  { %v1298_v17 = vadd.f32 %v1297_v63, %v1296_v18 }
 0x254   :  { %v1306_v49 = vpop.xlane.xlu0 %1305 }
 0x255   :  { %v1299_v6 = vrot.slane %v1298_v17, 2  ;;  %v1307_v19 = vrot.slane %v1306_v49, 4 }
 0x257   :  { %v1308_v59 = vadd.f32 %v1307_v19, %v1306_v49  ;;  %v1300_v35 = vadd.f32 %v1299_v6, %v1298_v17 }
 0x259   :  { %v1309_v51 = vrot.slane %v1308_v59, 2  ;;  %v1301_v23 = vrot.slane %v1300_v35, 1 }
 0x25b   :  { %v1310_v40 = vadd.f32 %v1309_v51, %v1308_v59  ;;  %v1302_v54 = vadd.f32 %v1301_v23, %v1300_v35 }
 0x25d   :  { %1496 = vpush %v1302_v54  ;;  %v1311_v38 = vrot.slane %v1310_v40, 1 }
 0x25f   :  { %v1312_v62 = vadd.f32 %v1311_v38, %v1310_v40 }
 0x261   :  { %1498 = vpush %v1312_v62 }
 0x270   :  { %v1216_v27 = vpop.f32.mrb[0].mxu0 }
 0x271   :  { %v1253_v61 = vadd.f32 %v1251_v10, %v1216_v27  ;;  %v1471_v2 = vpop.f32.mrb[1].mxu0 }
 0x273   :  { %1254 = vst [vmem:[#allocation23] sm:$0xff] %v1253_v61 }
 0x274   :  { %1975 = shalt.err (!%p1972_p8)
}
 0x275   :  { %s1976_s5 = scalar_lea.hbm %s2880_s11, 128 }
 0x276   :  { %p1977_p9 = scmp.ne.s32.totalorder %s2880_s11, %s1976_s5  ;;  %p1980_p10 = scmp.lt.u32.totalorder %s1976_s5, %s2880_s11 }
 0x278   :  { %p1982_p11 = pnand %p1980_p10, %p1977_p9 }
 0x27a   :  { %1985 = shalt.err (!%p1982_p11)
}
 0x27b   :  { %1327 = dma.vmem_to_hbm [thread:$0]  %s1325_s4, 128, %s2880_s11, [#allocation6]  }
 0x27c   :  { %s1986_s17 = scalar_lea.hbm %s2881_s12, 16 }
 0x27d   :  { %p1987_p12 = scmp.ne.s32.totalorder %s2881_s12, %s1986_s17  ;;  %p1990_p13 = scmp.lt.u32.totalorder %s1986_s17, %s2881_s12 }
 0x27f   :  { %p1992_p0 = pnand %p1990_p13, %p1987_p12 }
 0x28e   :  { %s1497_s28 = spop %1496 }
 0x292   :  { %s1499_s18 = spop %1498 }
 0x293   :  { %s1314_s6 = sadd.f32 %s1499_s18, %s1497_s28 }
 0x295   :  { %1317 = sst [smem:[#allocation24]] %s1314_s6 }
 0x296   :  { %1995 = shalt.err (!%p1992_p0)
}
 0x297   :  { %s2029_s29 = smov [#allocation24]  }
 0x298   :  { %1335 = dma.smem_to_hbm %s2029_s29, 16, %s2881_s12, [#allocation7]  }
 0x299   :  { %2008 = dma.done.wait [#allocation6], 128  }
 0x29a   :  { %2009 = vsyncadd [#allocation6], 4294967168 }
 0x29b   :  { %2010 = dma.done.wait [#allocation7], 16  }
 0x29c   :  { %2011 = vsyncadd [#allocation7], 4294967280 }
 0x29d   :  { %1342 = sfence }
 0x29e   :  { %1343 = vsyncpa [#allocation5], 1 }
 0x29f   :  { %1344 = vsyncpa [#allocation9], 1 }
 0x2a0   :  { %1345 = vsyncpa [#allocation12], 1 }
 0x2a1   :  { %1346 = vsyncpa [#allocation15], 1 }
 0x2a2   :  { %1347 = vsyncpa [#allocation18], 1 }
 0x2a3   :  { %1348 = vsyncpa [#allocation21], 1 }
 0x2a4   :  { %1349 = vsyncpa [#allocation6], 1 }
 0x2a5   :  { %1350 = vsyncpa [#allocation7], 1 }

</bundles_post_ra>
